<compile_context>
chip_gen: v6e
topology: v6e:2x2x1
jax: 0.10.0
libtpu: 0.0.40
codegen_flags: <defaults>
</compile_context>

<pallas_src>
import functools

import jax
import jax.numpy as jnp
from jax.experimental import pallas as pl
from jax.experimental.pallas import tpu as pltpu

# Layer widths of LoanNet: input_dim -> 1024 -> 512 -> 256 -> 128 -> 64 -> 32 -> 2
HIDDEN = (1024, 512, 256, 128, 64, 32)
OUT_DIM = 2
OUT_PAD = 128          # lane-padded output width (dense stores)
BN_EPS = 1e-5


# ----------------------------------------------------------------------------- kernel
def loannet_kernel(x_ref, *refs):
    """All 7 linear layers fused in one kernel body.

    refs = [w1, b1, w2, b2, ..., w7, b7, out_ref]
      w_i : (in_i, out_i)  bf16  -- BN scale already folded in (layers 1..6)
      b_i : (1, out_i)     f32   -- BN shift/scale folded in (layers 1..6)
      w7/b7 are zero-padded on the output axis to OUT_PAD lanes.
    """
    out_ref = refs[-1]
    params = refs[:-1]

    # Cast the streamed activation tile to bf16 once; accumulate in f32.
    h_bf16 = x_ref[...].astype(jnp.bfloat16)            # (tile, D)

    # 6 x (Linear + folded BN -> ReLU); dropout is identity at inference.
    for i in range(6):
        w, b = params[2 * i], params[2 * i + 1]
        y = jnp.dot(h_bf16, w[...], preferred_element_type=jnp.float32)
        h = jnp.maximum(y + b[...], 0.0)
        h_bf16 = h.astype(jnp.bfloat16)

    # Final Linear (no BN / ReLU), output padded to OUT_PAD lanes (dense store).
    w7, b7 = params[12], params[13]
    y = jnp.dot(h_bf16, w7[...], preferred_element_type=jnp.float32) + b7[...]
    out_ref[...] = y.astype(out_ref.dtype)


# ----------------------------------------------------------------------------- params
def make_raw_params(input_dim, key):
    """PyTorch-style parameters (same shapes/init style as LoanNet.__init__)."""
    dims = (input_dim,) + HIDDEN + (OUT_DIM,)
    layers = []
    for li in range(7):
        d_in, d_out = dims[li], dims[li + 1]
        key, kw, kb, k1, k2, k3, k4 = jax.random.split(key, 7)
        bound = 1.0 / (d_in ** 0.5)
        W = jax.random.uniform(kw, (d_out, d_in), jnp.float32, -bound, bound)
        b = jax.random.uniform(kb, (d_out,), jnp.float32, -bound, bound)
        if li < 6:
            gamma = jax.random.uniform(k1, (d_out,), jnp.float32, 0.5, 1.5)
            beta = 0.1 * jax.random.normal(k2, (d_out,), jnp.float32)
            mean = 0.1 * jax.random.normal(k3, (d_out,), jnp.float32)
            var = jax.random.uniform(k4, (d_out,), jnp.float32, 0.5, 1.5)
            layers.append((W, b, gamma, beta, mean, var))
        else:
            layers.append((W, b))
    return layers


def fold_params(raw):
    """Fold eval-mode BatchNorm into (W, b); transpose to (in, out); bf16 weights.

    BN(Linear(x)) = ((x W^T + b) - mean) * scale + beta
                  = x (W^T * scale) + ((b - mean) * scale + beta),
    with scale = gamma / sqrt(running_var + eps).
    """
    folded = []
    for li, layer in enumerate(raw):
        if li < 6:
            W, b, gamma, beta, mean, var = layer
            scale = gamma / jnp.sqrt(var + BN_EPS)
            w_eff = (W.T * scale[None, :]).astype(jnp.bfloat16)       # (in, out)
            b_eff = ((b - mean) * scale + beta)[None, :]              # (1, out) f32
        else:
            W, b = layer
            w_t = W.T                                                 # (32, 2)
            w_eff = jnp.zeros((w_t.shape[0], OUT_PAD), jnp.float32)
            w_eff = w_eff.at[:, :OUT_DIM].set(w_t).astype(jnp.bfloat16)
            b_eff = jnp.zeros((1, OUT_PAD), jnp.float32).at[0, :OUT_DIM].set(b)
        folded += [w_eff, b_eff]
    return folded


# ---------------------------------------------------------------------------- wrapper
@functools.partial(jax.jit, static_argnames=("batch_tile",))
def _loannet_forward_impl(x, folded_params, batch_tile):
    """Eval-mode LoanNet forward. x: (B, input_dim) f32 -> (B, 2) f32."""
    B, D = x.shape
    grid_b = pl.cdiv(B, batch_tile)
    b_pad = grid_b * batch_tile
    if b_pad != B:
        x = jnp.pad(x, ((0, b_pad - B), (0, 0)))

    # Only the activation tile and output tile are grid-pipelined; all parameters
    # (~1.5 MB in bf16) sit whole in VMEM with no double buffering.
    x_spec = pl.BlockSpec((batch_tile, D), lambda i: (i, 0))
    param_specs = [pl.BlockSpec(memory_space=pltpu.MemorySpace.VMEM)
                   for _ in folded_params]
    out_spec = pl.BlockSpec((batch_tile, OUT_PAD), lambda i: (i, 0))

    out = pl.pallas_call(
        loannet_kernel,
        out_shape=jax.ShapeDtypeStruct((b_pad, OUT_PAD), jnp.float32),
        grid_spec=pltpu.PrefetchScalarGridSpec(
            num_scalar_prefetch=0,
            grid=(grid_b,),
            in_specs=[x_spec] + param_specs,
            out_specs=out_spec,
        ),
        compiler_params=pltpu.CompilerParams(
            dimension_semantics=("parallel",),
            vmem_limit_bytes=32 * 1024 * 1024,
        ),
    )(x, *folded_params)
    return out[:B, :OUT_DIM]


def loannet_forward(x, folded_params, batch_tile=128):
    """Picks a sane static tile (avoid 8x padding on tiny batches), then calls jit."""
    B = x.shape[0]
    tile = min(batch_tile, max(8, ((B + 7) // 8) * 8))
    assert tile % 8 == 0
    return _loannet_forward_impl(x, folded_params, tile)


# ------------------------------------------------------------------------- references
def loannet_reference(x, raw):
    """Pure-JAX f32 eval-mode forward with UNfolded BatchNorm (module semantics)."""
    h = x.astype(jnp.float32)
    for li in range(6):
        W, b, gamma, beta, mean, var = raw[li]
        y = h @ W.T + b
        y = (y - mean) / jnp.sqrt(var + BN_EPS) * gamma + beta
        h = jnp.maximum(y, 0.0)
    W, b = raw[6]
    return h @ W.T + b


def folded_reference(x, folded):
    """Pure-JAX forward mirroring the kernel's folded/bf16 arithmetic exactly."""
    h = x.astype(jnp.float32)
    for i in range(6):
        w, b = folded[2 * i], folded[2 * i + 1]
        y = jnp.dot(h.astype(jnp.bfloat16), w, preferred_element_type=jnp.float32)
        h = jnp.maximum(y + b, 0.0)
    w7, b7 = folded[12], folded[13]
    y = jnp.dot(h.astype(jnp.bfloat16), w7, preferred_element_type=jnp.float32) + b7
    return y[:, :OUT_DIM]


# --------------------------------------------------------------------------------- main
if __name__ == "__main__":
    input_dim = 32
    batch = 16

    key = jax.random.PRNGKey(0)
    key, kx = jax.random.split(key)
    x = jax.random.normal(kx, (batch, input_dim), jnp.float32)

    raw_params = make_raw_params(input_dim, key)
    folded_params = fold_params(raw_params)

    out = loannet_forward(x, folded_params, batch_tile=128)
    out = jax.block_until_ready(out)
    assert out.shape == (batch, OUT_DIM)

    # Tight check: kernel vs. a reference with identical folded/bf16 arithmetic.
    tight = folded_reference(x, folded_params)
    assert jnp.allclose(out, tight, atol=1e-3, rtol=1e-3), "kernel != folded reference"

    # Semantics check: kernel vs. pure-f32 unfolded BatchNorm forward (bf16 drift
    # over 7 layers -> relaxed tolerance).
    ref = loannet_reference(x, raw_params)
    assert jnp.allclose(out, ref, atol=1e-1, rtol=1e-1), "kernel != f32 module reference"

    print("KERNEL_OK")
</pallas_src>

<mosaic_0001>
module attributes {stable_mosaic.version = 11 : i64} {
  func.func @loannet_kernel(%arg0: i32, %arg1: memref<16x32xf32, #tpu.memory_space<vmem>>, %arg2: memref<32x1024xbf16, #tpu.memory_space<vmem>>, %arg3: memref<1x1024xf32, #tpu.memory_space<vmem>>, %arg4: memref<1024x512xbf16, #tpu.memory_space<vmem>>, %arg5: memref<1x512xf32, #tpu.memory_space<vmem>>, %arg6: memref<512x256xbf16, #tpu.memory_space<vmem>>, %arg7: memref<1x256xf32, #tpu.memory_space<vmem>>, %arg8: memref<256x128xbf16, #tpu.memory_space<vmem>>, %arg9: memref<1x128xf32, #tpu.memory_space<vmem>>, %arg10: memref<128x64xbf16, #tpu.memory_space<vmem>>, %arg11: memref<1x64xf32, #tpu.memory_space<vmem>>, %arg12: memref<64x32xbf16, #tpu.memory_space<vmem>>, %arg13: memref<1x32xf32, #tpu.memory_space<vmem>>, %arg14: memref<32x128xbf16, #tpu.memory_space<vmem>>, %arg15: memref<1x128xf32, #tpu.memory_space<vmem>>, %arg16: memref<16x128xf32, #tpu.memory_space<vmem>>) attributes {dimension_semantics = [#tpu.dimension_semantics<parallel>], iteration_bounds = array<i64: 1>, scalar_prefetch = 0 : i64, scratch_operands = 0 : i64, tpu.core_type = #tpu.core_type<tc>, window_params = [{transform_indices = @transform_0, window_bounds = array<i64: 16, 32>}, {pipeline_mode = #tpu.pipeline_mode<synchronous>, transform_indices = @transform_1, window_bounds = array<i64: 32, 1024>}, {pipeline_mode = #tpu.pipeline_mode<synchronous>, transform_indices = @transform_2, window_bounds = array<i64: 1, 1024>}, {pipeline_mode = #tpu.pipeline_mode<synchronous>, transform_indices = @transform_3, window_bounds = array<i64: 1024, 512>}, {pipeline_mode = #tpu.pipeline_mode<synchronous>, transform_indices = @transform_4, window_bounds = array<i64: 1, 512>}, {pipeline_mode = #tpu.pipeline_mode<synchronous>, transform_indices = @transform_5, window_bounds = array<i64: 512, 256>}, {pipeline_mode = #tpu.pipeline_mode<synchronous>, transform_indices = @transform_6, window_bounds = array<i64: 1, 256>}, {pipeline_mode = #tpu.pipeline_mode<synchronous>, transform_indices = @transform_7, window_bounds = array<i64: 256, 128>}, {pipeline_mode = #tpu.pipeline_mode<synchronous>, transform_indices = @transform_8, window_bounds = array<i64: 1, 128>}, {pipeline_mode = #tpu.pipeline_mode<synchronous>, transform_indices = @transform_9, window_bounds = array<i64: 128, 64>}, {pipeline_mode = #tpu.pipeline_mode<synchronous>, transform_indices = @transform_10, window_bounds = array<i64: 1, 64>}, {pipeline_mode = #tpu.pipeline_mode<synchronous>, transform_indices = @transform_11, window_bounds = array<i64: 64, 32>}, {pipeline_mode = #tpu.pipeline_mode<synchronous>, transform_indices = @transform_12, window_bounds = array<i64: 1, 32>}, {pipeline_mode = #tpu.pipeline_mode<synchronous>, transform_indices = @transform_13, window_bounds = array<i64: 32, 128>}, {pipeline_mode = #tpu.pipeline_mode<synchronous>, transform_indices = @transform_14, window_bounds = array<i64: 1, 128>}, {transform_indices = @transform_15, window_bounds = array<i64: 16, 128>}]} {
    %c0 = arith.constant 0 : index
    %c0_0 = arith.constant 0 : index
    %0 = vector.load %arg1[%c0, %c0_0] : memref<16x32xf32, #tpu.memory_space<vmem>>, vector<16x32xf32>
    %1 = arith.truncf %0 : vector<16x32xf32> to vector<16x32xbf16>
    %c0_1 = arith.constant 0 : index
    %c0_2 = arith.constant 0 : index
    %2 = vector.load %arg2[%c0_1, %c0_2] : memref<32x1024xbf16, #tpu.memory_space<vmem>>, vector<32x1024xbf16>
    %cst = arith.constant dense<0.000000e+00> : vector<16x1024xf32>
    %3 = tpu.matmul %1, %2, %cst {dimension_numbers = #tpu.dot_dimension_numbers<[1], [0], [0], [1], [0, 0, 1, 1], [], []>} : vector<16x32xbf16>, vector<32x1024xbf16>, vector<16x1024xf32> -> vector<16x1024xf32>
    %c0_3 = arith.constant 0 : index
    %c0_4 = arith.constant 0 : index
    %4 = vector.load %arg3[%c0_3, %c0_4] : memref<1x1024xf32, #tpu.memory_space<vmem>>, vector<1x1024xf32>
    %5 = vector.broadcast %4 : vector<1x1024xf32> to vector<16x1024xf32>
    %6 = arith.addf %3, %5 : vector<16x1024xf32>
    %cst_5 = arith.constant 0.000000e+00 : f32
    %7 = vector.broadcast %cst_5 : f32 to vector<16x1024xf32>
    %8 = arith.maximumf %6, %7 : vector<16x1024xf32>
    %9 = arith.truncf %8 : vector<16x1024xf32> to vector<16x1024xbf16>
    %c0_6 = arith.constant 0 : index
    %c0_7 = arith.constant 0 : index
    %10 = vector.load %arg4[%c0_6, %c0_7] : memref<1024x512xbf16, #tpu.memory_space<vmem>>, vector<1024x512xbf16>
    %cst_8 = arith.constant dense<0.000000e+00> : vector<16x512xf32>
    %11 = tpu.matmul %9, %10, %cst_8 {dimension_numbers = #tpu.dot_dimension_numbers<[1], [0], [0], [1], [0, 0, 1, 1], [], []>} : vector<16x1024xbf16>, vector<1024x512xbf16>, vector<16x512xf32> -> vector<16x512xf32>
    %c0_9 = arith.constant 0 : index
    %c0_10 = arith.constant 0 : index
    %12 = vector.load %arg5[%c0_9, %c0_10] : memref<1x512xf32, #tpu.memory_space<vmem>>, vector<1x512xf32>
    %13 = vector.broadcast %12 : vector<1x512xf32> to vector<16x512xf32>
    %14 = arith.addf %11, %13 : vector<16x512xf32>
    %cst_11 = arith.constant 0.000000e+00 : f32
    %15 = vector.broadcast %cst_11 : f32 to vector<16x512xf32>
    %16 = arith.maximumf %14, %15 : vector<16x512xf32>
    %17 = arith.truncf %16 : vector<16x512xf32> to vector<16x512xbf16>
    %c0_12 = arith.constant 0 : index
    %c0_13 = arith.constant 0 : index
    %18 = vector.load %arg6[%c0_12, %c0_13] : memref<512x256xbf16, #tpu.memory_space<vmem>>, vector<512x256xbf16>
    %cst_14 = arith.constant dense<0.000000e+00> : vector<16x256xf32>
    %19 = tpu.matmul %17, %18, %cst_14 {dimension_numbers = #tpu.dot_dimension_numbers<[1], [0], [0], [1], [0, 0, 1, 1], [], []>} : vector<16x512xbf16>, vector<512x256xbf16>, vector<16x256xf32> -> vector<16x256xf32>
    %c0_15 = arith.constant 0 : index
    %c0_16 = arith.constant 0 : index
    %20 = vector.load %arg7[%c0_15, %c0_16] : memref<1x256xf32, #tpu.memory_space<vmem>>, vector<1x256xf32>
    %21 = vector.broadcast %20 : vector<1x256xf32> to vector<16x256xf32>
    %22 = arith.addf %19, %21 : vector<16x256xf32>
    %cst_17 = arith.constant 0.000000e+00 : f32
    %23 = vector.broadcast %cst_17 : f32 to vector<16x256xf32>
    %24 = arith.maximumf %22, %23 : vector<16x256xf32>
    %25 = arith.truncf %24 : vector<16x256xf32> to vector<16x256xbf16>
    %c0_18 = arith.constant 0 : index
    %c0_19 = arith.constant 0 : index
    %26 = vector.load %arg8[%c0_18, %c0_19] : memref<256x128xbf16, #tpu.memory_space<vmem>>, vector<256x128xbf16>
    %cst_20 = arith.constant dense<0.000000e+00> : vector<16x128xf32>
    %27 = tpu.matmul %25, %26, %cst_20 {dimension_numbers = #tpu.dot_dimension_numbers<[1], [0], [0], [1], [0, 0, 1, 1], [], []>} : vector<16x256xbf16>, vector<256x128xbf16>, vector<16x128xf32> -> vector<16x128xf32>
    %c0_21 = arith.constant 0 : index
    %c0_22 = arith.constant 0 : index
    %28 = vector.load %arg9[%c0_21, %c0_22] : memref<1x128xf32, #tpu.memory_space<vmem>>, vector<1x128xf32>
    %29 = vector.broadcast %28 : vector<1x128xf32> to vector<16x128xf32>
    %30 = arith.addf %27, %29 : vector<16x128xf32>
    %cst_23 = arith.constant 0.000000e+00 : f32
    %31 = vector.broadcast %cst_23 : f32 to vector<16x128xf32>
    %32 = arith.maximumf %30, %31 : vector<16x128xf32>
    %33 = arith.truncf %32 : vector<16x128xf32> to vector<16x128xbf16>
    %c0_24 = arith.constant 0 : index
    %c0_25 = arith.constant 0 : index
    %34 = vector.load %arg10[%c0_24, %c0_25] : memref<128x64xbf16, #tpu.memory_space<vmem>>, vector<128x64xbf16>
    %cst_26 = arith.constant dense<0.000000e+00> : vector<16x64xf32>
    %35 = tpu.matmul %33, %34, %cst_26 {dimension_numbers = #tpu.dot_dimension_numbers<[1], [0], [0], [1], [0, 0, 1, 1], [], []>} : vector<16x128xbf16>, vector<128x64xbf16>, vector<16x64xf32> -> vector<16x64xf32>
    %c0_27 = arith.constant 0 : index
    %c0_28 = arith.constant 0 : index
    %36 = vector.load %arg11[%c0_27, %c0_28] : memref<1x64xf32, #tpu.memory_space<vmem>>, vector<1x64xf32>
    %37 = vector.broadcast %36 : vector<1x64xf32> to vector<16x64xf32>
    %38 = arith.addf %35, %37 : vector<16x64xf32>
    %cst_29 = arith.constant 0.000000e+00 : f32
    %39 = vector.broadcast %cst_29 : f32 to vector<16x64xf32>
    %40 = arith.maximumf %38, %39 : vector<16x64xf32>
    %41 = arith.truncf %40 : vector<16x64xf32> to vector<16x64xbf16>
    %c0_30 = arith.constant 0 : index
    %c0_31 = arith.constant 0 : index
    %42 = vector.load %arg12[%c0_30, %c0_31] : memref<64x32xbf16, #tpu.memory_space<vmem>>, vector<64x32xbf16>
    %cst_32 = arith.constant dense<0.000000e+00> : vector<16x32xf32>
    %43 = tpu.matmul %41, %42, %cst_32 {dimension_numbers = #tpu.dot_dimension_numbers<[1], [0], [0], [1], [0, 0, 1, 1], [], []>} : vector<16x64xbf16>, vector<64x32xbf16>, vector<16x32xf32> -> vector<16x32xf32>
    %c0_33 = arith.constant 0 : index
    %c0_34 = arith.constant 0 : index
    %44 = vector.load %arg13[%c0_33, %c0_34] : memref<1x32xf32, #tpu.memory_space<vmem>>, vector<1x32xf32>
    %45 = vector.broadcast %44 : vector<1x32xf32> to vector<16x32xf32>
    %46 = arith.addf %43, %45 : vector<16x32xf32>
    %cst_35 = arith.constant 0.000000e+00 : f32
    %47 = vector.broadcast %cst_35 : f32 to vector<16x32xf32>
    %48 = arith.maximumf %46, %47 : vector<16x32xf32>
    %49 = arith.truncf %48 : vector<16x32xf32> to vector<16x32xbf16>
    %c0_36 = arith.constant 0 : index
    %c0_37 = arith.constant 0 : index
    %50 = vector.load %arg14[%c0_36, %c0_37] : memref<32x128xbf16, #tpu.memory_space<vmem>>, vector<32x128xbf16>
    %cst_38 = arith.constant dense<0.000000e+00> : vector<16x128xf32>
    %51 = tpu.matmul %49, %50, %cst_38 {dimension_numbers = #tpu.dot_dimension_numbers<[1], [0], [0], [1], [0, 0, 1, 1], [], []>} : vector<16x32xbf16>, vector<32x128xbf16>, vector<16x128xf32> -> vector<16x128xf32>
    %c0_39 = arith.constant 0 : index
    %c0_40 = arith.constant 0 : index
    %52 = vector.load %arg15[%c0_39, %c0_40] : memref<1x128xf32, #tpu.memory_space<vmem>>, vector<1x128xf32>
    %53 = vector.broadcast %52 : vector<1x128xf32> to vector<16x128xf32>
    %54 = arith.addf %51, %53 : vector<16x128xf32>
    %c0_41 = arith.constant 0 : index
    %c0_42 = arith.constant 0 : index
    %55 = vector.load %arg16[%c0_41, %c0_42] : memref<16x128xf32, #tpu.memory_space<vmem>>, vector<16x128xf32>
    tpu.vector_store %arg16[%c0_41, %c0_42], %54 {strides = array<i32>} : memref<16x128xf32, #tpu.memory_space<vmem>>, vector<16x128xf32>,
    return
  }
  func.func @transform_0(%arg0: i32) -> (i32, i32) {
    %c0_i32 = arith.constant 0 : i32
    %c0_i32_0 = arith.constant 0 : i32
    return %arg0, %c0_i32 : i32, i32
  }
  func.func @transform_1(%arg0: i32) -> (i32, i32) {
    %c0_i32 = arith.constant 0 : i32
    %c0_i32_0 = arith.constant 0 : i32
    %c0_i32_1 = arith.constant 0 : i32
    return %c0_i32, %c0_i32_0 : i32, i32
  }
  func.func @transform_2(%arg0: i32) -> (i32, i32) {
    %c0_i32 = arith.constant 0 : i32
    %c0_i32_0 = arith.constant 0 : i32
    %c0_i32_1 = arith.constant 0 : i32
    return %c0_i32, %c0_i32_0 : i32, i32
  }
  func.func @transform_3(%arg0: i32) -> (i32, i32) {
    %c0_i32 = arith.constant 0 : i32
    %c0_i32_0 = arith.constant 0 : i32
    %c0_i32_1 = arith.constant 0 : i32
    return %c0_i32, %c0_i32_0 : i32, i32
  }
  func.func @transform_4(%arg0: i32) -> (i32, i32) {
    %c0_i32 = arith.constant 0 : i32
    %c0_i32_0 = arith.constant 0 : i32
    %c0_i32_1 = arith.constant 0 : i32
    return %c0_i32, %c0_i32_0 : i32, i32
  }
  func.func @transform_5(%arg0: i32) -> (i32, i32) {
    %c0_i32 = arith.constant 0 : i32
    %c0_i32_0 = arith.constant 0 : i32
    %c0_i32_1 = arith.constant 0 : i32
    return %c0_i32, %c0_i32_0 : i32, i32
  }
  func.func @transform_6(%arg0: i32) -> (i32, i32) {
    %c0_i32 = arith.constant 0 : i32
    %c0_i32_0 = arith.constant 0 : i32
    %c0_i32_1 = arith.constant 0 : i32
    return %c0_i32, %c0_i32_0 : i32, i32
  }
  func.func @transform_7(%arg0: i32) -> (i32, i32) {
    %c0_i32 = arith.constant 0 : i32
    %c0_i32_0 = arith.constant 0 : i32
    %c0_i32_1 = arith.constant 0 : i32
    return %c0_i32, %c0_i32_0 : i32, i32
  }
  func.func @transform_8(%arg0: i32) -> (i32, i32) {
    %c0_i32 = arith.constant 0 : i32
    %c0_i32_0 = arith.constant 0 : i32
    %c0_i32_1 = arith.constant 0 : i32
    return %c0_i32, %c0_i32_0 : i32, i32
  }
  func.func @transform_9(%arg0: i32) -> (i32, i32) {
    %c0_i32 = arith.constant 0 : i32
    %c0_i32_0 = arith.constant 0 : i32
    %c0_i32_1 = arith.constant 0 : i32
    return %c0_i32, %c0_i32_0 : i32, i32
  }
  func.func @transform_10(%arg0: i32) -> (i32, i32) {
    %c0_i32 = arith.constant 0 : i32
    %c0_i32_0 = arith.constant 0 : i32
    %c0_i32_1 = arith.constant 0 : i32
    return %c0_i32, %c0_i32_0 : i32, i32
  }
  func.func @transform_11(%arg0: i32) -> (i32, i32) {
    %c0_i32 = arith.constant 0 : i32
    %c0_i32_0 = arith.constant 0 : i32
    %c0_i32_1 = arith.constant 0 : i32
    return %c0_i32, %c0_i32_0 : i32, i32
  }
  func.func @transform_12(%arg0: i32) -> (i32, i32) {
    %c0_i32 = arith.constant 0 : i32
    %c0_i32_0 = arith.constant 0 : i32
    %c0_i32_1 = arith.constant 0 : i32
    return %c0_i32, %c0_i32_0 : i32, i32
  }
  func.func @transform_13(%arg0: i32) -> (i32, i32) {
    %c0_i32 = arith.constant 0 : i32
    %c0_i32_0 = arith.constant 0 : i32
    %c0_i32_1 = arith.constant 0 : i32
    return %c0_i32, %c0_i32_0 : i32, i32
  }
  func.func @transform_14(%arg0: i32) -> (i32, i32) {
    %c0_i32 = arith.constant 0 : i32
    %c0_i32_0 = arith.constant 0 : i32
    %c0_i32_1 = arith.constant 0 : i32
    return %c0_i32, %c0_i32_0 : i32, i32
  }
  func.func @transform_15(%arg0: i32) -> (i32, i32) {
    %c0_i32 = arith.constant 0 : i32
    %c0_i32_0 = arith.constant 0 : i32
    return %arg0, %c0_i32 : i32, i32
  }
}

</mosaic_0001>

<bundles_post_ra>
// kernel: _loannet_forward_impl.1
= control target key start
LH: loop header
LB: loop body
LE: loop exit
PB: predicated region body
PF: predicated region fallthrough
CT: control target
= control target key end

     0   :  { %20 = vsyncpa [#allocation3], 0  ;;  %s4883_s0 = inlined_call_operand.hbm [shape: f32[16,32], index: 0, kind: input, shape index: {}]   ;;  %s4884_s1 = inlined_call_operand.vmem [shape: bf16[32,1024], index: 1, kind: input, shape index: {}]   ;;  %s4885_s2 = inlined_call_operand.hbm [shape: f32[1,1024], index: 2, kind: input, shape index: {}]   ;;  %s4886_s3 = inlined_call_operand.hbm [shape: bf16[1024,512], index: 3, kind: input, shape index: {}]   ;;  %s4887_s4 = inlined_call_operand.hbm [shape: f32[1,512], index: 4, kind: input, shape index: {}]   ;;  %s4888_s5 = inlined_call_operand.hbm [shape: bf16[512,256], index: 5, kind: input, shape index: {}]   ;;  %s4889_s6 = inlined_call_operand.hbm [shape: f32[1,256], index: 6, kind: input, shape index: {}]   ;;  %s4890_s7 = inlined_call_operand.hbm [shape: bf16[256,128], index: 7, kind: input, shape index: {}]   ;;  %s4891_s8 = inlined_call_operand.hbm [shape: f32[1,128], index: 8, kind: input, shape index: {}]   ;;  %s4892_s9 = inlined_call_operand.vmem [shape: bf16[128,64], index: 9, kind: input, shape index: {}]   ;;  %s4893_s10 = inlined_call_operand.vmem [shape: f32[1,64], index: 10, kind: input, shape index: {}]   ;;  %s4894_s11 = inlined_call_operand.vmem [shape: bf16[64,32], index: 11, kind: input, shape index: {}]   ;;  %s4895_s12 = inlined_call_operand.vmem [shape: f32[1,32], index: 12, kind: input, shape index: {}]   ;;  %s4896_s13 = inlined_call_operand.hbm [shape: bf16[32,128], index: 13, kind: input, shape index: {}]   ;;  %s4897_s14 = inlined_call_operand.vmem [shape: f32[1,128], index: 14, kind: input, shape index: {}]   ;;  %s4898_s15 = inlined_call_operand.vmem [shape: f32[16,128], index: 15, kind: output, shape index: {}]  }
   0x1   :  { %21 = vsyncpa [#allocation5], 0 }
   0x2   :  { %22 = vsyncpa [#allocation8], 0 }
   0x3   :  { %23 = vsyncpa [#allocation11], 0 }
   0x4   :  { %24 = vsyncpa [#allocation14], 0  ;;  %s4540_s18 = smov [#allocation4]   ;;  %s4541_s20 = smov [#allocation7]  }
   0x5   :  { %s45_s19 = sshll.u32 %s4540_s18, 4  ;;  %s67_s21 = sshll.u32 %s4541_s20, 4  ;;  %s46_s19 = int_to_ptr.vmem [resolvable:$true] %s45_s19  ;;  %s68_s21 = int_to_ptr.vmem [resolvable:$true] %s67_s21 }
   0x6   :  { %s4358_s22 = scalar_lea.vmem %s46_s19, 128  ;;  %p4363_p1 = scmp.lt.s32.totalorder %s46_s19, %s46_s19 }
   0x7   :  { %p4359_p0 = scmp.ne.s32.totalorder %s46_s19, %s4358_s22  ;;  %p4364_p2 = scmp.lt.s32.totalorder %s4358_s22, %s4358_s22 }
   0x9   :  { %p4365_p3 = por %p4364_p2, %p4363_p1 }
   0xb   :  { %p4366_p4 = pnand %p4365_p3, %p4359_p0 }
   0xd   :  { %4369 = shalt.err (!%p4366_p4)
}
   0xe   :  { %48 = dma.hbm_to_vmem [thread:$0]  %s4885_s2, 128, %s46_s19, [#allocation5]  }
   0xf   :  { %s4378_s25 = scalar_lea.vmem %s68_s21, 64  ;;  %p4383_p6 = scmp.lt.s32.totalorder %s68_s21, %s68_s21 }
  0x10   :  { %p4379_p5 = scmp.ne.s32.totalorder %s68_s21, %s4378_s25  ;;  %p4384_p7 = scmp.lt.s32.totalorder %s4378_s25, %s4378_s25 }
  0x12   :  { %p4385_p8 = por %p4384_p7, %p4383_p6 }
  0x14   :  { %p4386_p9 = pnand %p4385_p8, %p4379_p5 }
  0x16   :  { %4389 = shalt.err (!%p4386_p9)
}
  0x17   :  { %70 = dma.hbm_to_vmem [thread:$0]  %s4887_s4, 64, %s68_s21, [#allocation8]  }
  0x18   :  { %s4542_s28 = smov [#allocation10]   ;;  %s4543_s30 = smov [#allocation13]  }
  0x19   :  { %s89_s29 = sshll.u32 %s4542_s28, 4  ;;  %s111_s16 = sshll.u32 %s4543_s30, 4  ;;  %s90_s29 = int_to_ptr.vmem [resolvable:$true] %s89_s29  ;;  %s112_s16 = int_to_ptr.vmem [resolvable:$true] %s111_s16 }
  0x1a   :  { %s4398_s17 = scalar_lea.vmem %s90_s29, 32  ;;  %p4403_p11 = scmp.lt.s32.totalorder %s90_s29, %s90_s29 }
  0x1b   :  { %p4399_p10 = scmp.ne.s32.totalorder %s90_s29, %s4398_s17  ;;  %p4404_p12 = scmp.lt.s32.totalorder %s4398_s17, %s4398_s17 }
  0x1d   :  { %p4405_p13 = por %p4404_p12, %p4403_p11 }
  0x1f   :  { %p4406_p0 = pnand %p4405_p13, %p4399_p10 }
  0x21   :  { %4409 = shalt.err (!%p4406_p0)
}
  0x22   :  { %92 = dma.hbm_to_vmem [thread:$0]  %s4889_s6, 32, %s90_s29, [#allocation11]  }
  0x23   :  { %s4418_s19 = scalar_lea.vmem %s112_s16, 16  ;;  %s4422_s4 = scalar_lea.vmem %s112_s16, 32 }
  0x24   :  { %p4419_p1 = scmp.ne.s32.totalorder %s112_s16, %s4418_s19  ;;  %p4423_p2 = scmp.lt.s32.totalorder %s112_s16, %s112_s16 }
  0x25   :  { %p4424_p3 = scmp.lt.s32.totalorder %s4422_s4, %s4418_s19 }
  0x27   :  { %p4425_p4 = por %p4424_p3, %p4423_p2 }
  0x29   :  { %p4426_p5 = pnand %p4425_p4, %p4419_p1 }
  0x2b   :  { %4429 = shalt.err (!%p4426_p5)
}
  0x2c   :  { %114 = dma.hbm_to_vmem [thread:$0]  %s4891_s8, 16, %s112_s16, [#allocation14]  }
  0x2d   :  { %s4544_s22 = smov [#allocation2]  }
  0x2e   :  { %s30_s23 = sshll.u32 %s4544_s22, 4  ;;  %s31_s23 = int_to_ptr.vmem [resolvable:$true] %s30_s23 }
  0x2f   :  { %s4438_s24 = scalar_lea.vmem %s31_s23, 256  ;;  %p4443_p7 = scmp.lt.s32.totalorder %s31_s23, %s31_s23 }
  0x30   :  { %p4439_p6 = scmp.ne.s32.totalorder %s31_s23, %s4438_s24  ;;  %p4444_p8 = scmp.lt.s32.totalorder %s4438_s24, %s4438_s24 }
  0x32   :  { %p4445_p9 = por %p4444_p8, %p4443_p7 }
  0x34   :  { %p4446_p10 = pnand %p4445_p9, %p4439_p6 }
  0x36   :  { %4449 = shalt.err (!%p4446_p10)
}
  0x37   :  { %s4545_s6 = smov 128   ;;  %s4546_s25 = smov 8  }
  0x38   :  { %36 = dma.hbm_to_vmem [thread:$0]  %s4883_s0, 256, %s31_s23, [#allocation3], %s4545_s6, %s4545_s6, %s4546_s25  }
  0x39   :  { %s4547_s8 = smov [#allocation6]  }
  0x3a   :  { %s54_s28 = sshll.u32 %s4547_s8, 4  ;;  %s55_s28 = int_to_ptr.vmem [resolvable:$true] %s54_s28 }
  0x3b   :  { %s4458_s29 = scalar_lea.vmem %s55_s28, 32768  ;;  %p4463_p12 = scmp.lt.s32.totalorder %s55_s28, %s55_s28 }
  0x3c   :  { %p4459_p11 = scmp.ne.s32.totalorder %s55_s28, %s4458_s29  ;;  %p4464_p13 = scmp.lt.s32.totalorder %s4458_s29, %s4458_s29 }
  0x3e   :  { %p4465_p0 = por %p4464_p13, %p4463_p12 }
  0x40   :  { %p4466_p1 = pnand %p4465_p0, %p4459_p11 }
  0x42   :  { %4469 = shalt.err (!%p4466_p1)
}
  0x43   :  { %s4548_s30 = smov 256   ;;  %s4549_s16 = smov 16  }
  0x44   :  { %60 = dma.hbm_to_vmem [thread:$0]  %s4886_s3, 32768, %s55_s28, [#allocation5], %s4548_s30, %s4548_s30, %s4549_s16  }
  0x45   :  { %s4550_s18 = smov [#allocation9]   ;;  %s4551_s4 = smov [#allocation12]  }
  0x46   :  { %s76_s19 = sshll.u32 %s4550_s18, 4  ;;  %s98_s0 = sshll.u32 %s4551_s4, 4  ;;  %s77_s19 = int_to_ptr.vmem [resolvable:$true] %s76_s19  ;;  %s99_s0 = int_to_ptr.vmem [resolvable:$true] %s98_s0 }
  0x47   :  { %s4478_s20 = scalar_lea.vmem %s77_s19, 8192  ;;  %p4483_p3 = scmp.lt.s32.totalorder %s77_s19, %s77_s19 }
  0x48   :  { %p4479_p2 = scmp.ne.s32.totalorder %s77_s19, %s4478_s20  ;;  %p4484_p4 = scmp.lt.s32.totalorder %s4478_s20, %s4478_s20 }
  0x4a   :  { %p4485_p5 = por %p4484_p4, %p4483_p3 }
  0x4c   :  { %p4486_p6 = pnand %p4485_p5, %p4479_p2 }
  0x4e   :  { %4489 = shalt.err (!%p4486_p6)
}
  0x4f   :  { %82 = dma.hbm_to_vmem [thread:$0]  %s4888_s5, 8192, %s77_s19, [#allocation8], %s4545_s6, %s4545_s6, %s4546_s25  }
  0x50   :  { %s4498_s3 = scalar_lea.vmem %s99_s0, 2048  ;;  %p4503_p8 = scmp.lt.s32.totalorder %s99_s0, %s99_s0 }
  0x51   :  { %p4499_p7 = scmp.ne.s32.totalorder %s99_s0, %s4498_s3  ;;  %p4504_p9 = scmp.lt.s32.totalorder %s4498_s3, %s4498_s3 }
  0x53   :  { %p4505_p10 = por %p4504_p9, %p4503_p8 }
  0x55   :  { %p4506_p11 = pnand %p4505_p10, %p4499_p7 }
  0x57   :  { %4509 = shalt.err (!%p4506_p11)
}
  0x58   :  { %s4552_s23 = smov 64   ;;  %s4553_s24 = smov 4  }
  0x59   :  { %104 = dma.hbm_to_vmem [thread:$0]  %s4890_s7, 2048, %s99_s0, [#allocation11], %s4552_s23, %s4552_s23, %s4553_s24  }
  0x5a   :  { %s4554_s8 = smov [#allocation15]  }
  0x5b   :  { %s128_s28 = sshll.u32 %s4554_s8, 4  ;;  %s129_s28 = int_to_ptr.vmem [resolvable:$true] %s128_s28 }
  0x5c   :  { %s4518_s29 = scalar_lea.vmem %s129_s28, 256  ;;  %p4523_p13 = scmp.lt.s32.totalorder %s129_s28, %s129_s28 }
  0x5d   :  { %p4519_p12 = scmp.ne.s32.totalorder %s129_s28, %s4518_s29  ;;  %p4524_p0 = scmp.lt.s32.totalorder %s4518_s29, %s4518_s29 }
  0x5f   :  { %p4525_p1 = por %p4524_p0, %p4523_p13 }
  0x61   :  { %p4526_p2 = pnand %p4525_p1, %p4519_p12 }
  0x63   :  { %4529 = shalt.err (!%p4526_p2)
}
  0x64   :  { %134 = dma.hbm_to_vmem [thread:$0]  %s4896_s13, 256, %s129_s28, [#allocation14], %s4552_s23, %s4552_s23, %s4553_s24  }
  0x65   :  { %4530 = dma.done.wait [#allocation3], 256  }
  0x66   :  { %4531 = vsyncadd [#allocation3], 4294967040 }
  0x67   :  { %4532 = dma.done.wait [#allocation5], 32896  }
  0x68   :  { %4533 = vsyncadd [#allocation5], 4294934400 }
  0x69   :  { %4534 = dma.done.wait [#allocation8], 8256  }
  0x6a   :  { %4535 = vsyncadd [#allocation8], 4294959040 }
  0x6b   :  { %4536 = dma.done.wait [#allocation11], 2080  }
  0x6c   :  { %4537 = vsyncadd [#allocation11], 4294965216 }
  0x6d   :  { %4538 = dma.done.wait [#allocation14], 272  }
  0x6e   :  { %4539 = vsyncadd [#allocation14], 4294967024  ;;  %v4555_v0 = vmov 0   ;;  %v176_v1 = vld [vmem:[%s4884_s1 + $0x40] sm:$0xff]  ;;  %v177_v3 = vld [vmem:[%s4884_s1 + $0x48] sm:$0xff]  ;;  %vm306_vm0 = vcmask 261120  }
  0x6f   :  { %342 = vmatprep.mubr.bf16.mxu0 %v4555_v0  ;;  %385 = vmatprep.mubr.bf16.mxu1 %v4555_v0  ;;  %v180_v2 = vld [vmem:[%s4884_s1 + $0x60] sm:$0xff]  ;;  %v181_v5 = vld [vmem:[%s4884_s1 + $0x68] sm:$0xff]  ;;  %v178_v16 = vld [vmem:[%s4884_s1 + $0x50] sm:$0xff]  ;;  %vm4557_vm1 = vmmov 0   ;;  %vm3241_vm2 = vcmask 523264  }
  0x70   :  { %v3376_v4 = vcombine.high %v176_v1, %v180_v2  ;;  %v3375_v6 = vcombine.low %v176_v1, %v180_v2  ;;  %v168_v7 = vld [vmem:[%s4884_s1] sm:$0xff]  ;;  %v3378_v9 = vcombine.high %v177_v3, %v181_v5  ;;  %v3377_v10 = vcombine.low %v177_v3, %v181_v5  ;;  %v169_v12 = vld [vmem:[%s4884_s1 + $0x8] sm:$0xff]  ;;  %v182_v17 = vld [vmem:[%s4884_s1 + $0x70] sm:$0xff] }
  0x71   :  { %v172_v8 = vld [vmem:[%s4884_s1 + $0x20] sm:$0xff]  ;;  %v173_v13 = vld [vmem:[%s4884_s1 + $0x28] sm:$0xff]  ;;  %v179_v20 = vld [vmem:[%s4884_s1 + $0x58] sm:$0xff]  ;;  %v3380_v23 = vcombine.high %v178_v16, %v182_v17  ;;  %v3379_v30 = vcombine.low %v178_v16, %v182_v17 }
  0x72   :  { %v3368_v11 = vcombine.high %v168_v7, %v172_v8  ;;  %322 = vmatprep.subr.bf16.mxu0 %v3376_v4  ;;  %v3370_v14 = vcombine.high %v169_v12, %v173_v13  ;;  %v165_v15 = vld [vmem:[#allocation2] sm:$0xff]  ;;  %365 = vmatprep.subr.bf16.mxu1 %v3378_v9  ;;  %v3367_v18 = vcombine.low %v168_v7, %v172_v8  ;;  %v166_v19 = vld [vmem:[#allocation2 + $0x8] sm:$0xff]  ;;  %v183_v21 = vld [vmem:[%s4884_s1 + $0x78] sm:$0xff] }
  0x73   :  { %323 = vmatpush1.bf16.msra.mxu0 %v3375_v6  ;;  %366 = vmatpush1.bf16.msra.mxu1 %v3377_v10  ;;  %v3369_v22 = vcombine.low %v169_v12, %v173_v13  ;;  %v170_v24 = vld [vmem:[%s4884_s1 + $0x10] sm:$0xff]  ;;  %v3382_v26 = vcombine.high %v179_v20, %v183_v21  ;;  %v171_v27 = vld [vmem:[%s4884_s1 + $0x18] sm:$0xff]  ;;  %v167_v28 = vpack.c.bf16 %v166_v19, %v165_v15 }
  0x74   :  { %324 = vmatprep.subr.bf16.mxu0 %v3368_v11  ;;  %v174_v25 = vld [vmem:[%s4884_s1 + $0x30] sm:$0xff]  ;;  %367 = vmatprep.subr.bf16.mxu1 %v3370_v14  ;;  %v175_v29 = vld [vmem:[%s4884_s1 + $0x38] sm:$0xff]  ;;  %v3381_v31 = vcombine.low %v179_v20, %v183_v21 }
  0x75   :  { %v3372_v32 = vcombine.high %v170_v24, %v174_v25  ;;  %v3374_v33 = vcombine.high %v171_v27, %v175_v29  ;;  %v3371_v34 = vcombine.low %v170_v24, %v174_v25  ;;  %v3373_v35 = vcombine.low %v171_v27, %v175_v29  ;;  %v3842_v36 = vld [vmem:[#allocation6 + $0xe4] ss:$16 sps:$4 sm:$0xff]   ;;  %v3840_v38 = vld [vmem:[#allocation6 + $0xe0] ss:$16 sps:$4 sm:$0xff]  }
  0x76   :  { %v3845_v37 = vld [vmem:[#allocation6 + $0x2e4] ss:$16 sps:$4 sm:$0xff]   ;;  %v3843_v39 = vld [vmem:[#allocation6 + $0x2e0] ss:$16 sps:$4 sm:$0xff]  }
  0x77   :  { %325 = vmatpush1.bf16.msra.mxu0 %v3367_v18  ;;  %368 = vmatpush1.bf16.msra.mxu1 %v3369_v22  ;;  %v3848_v40 = vld [vmem:[#allocation6 + $0xc4] ss:$16 sps:$4 sm:$0xff]   ;;  %v3846_v42 = vld [vmem:[#allocation6 + $0xc0] ss:$16 sps:$4 sm:$0xff]  }
  0x78   :  { %408 = vmatprep.subr.bf16.mxu0 %v3380_v23  ;;  %451 = vmatprep.subr.bf16.mxu1 %v3382_v26  ;;  %v3851_v41 = vld [vmem:[#allocation6 + $0x2c4] ss:$16 sps:$4 sm:$0xff]   ;;  %v3849_v43 = vld [vmem:[#allocation6 + $0x2c0] ss:$16 sps:$4 sm:$0xff]  }
  0x79   :  { %v3854_v44 = vld [vmem:[#allocation6 + $0xa4] ss:$16 sps:$4 sm:$0xff]   ;;  %v3852_v46 = vld [vmem:[#allocation6 + $0xa0] ss:$16 sps:$4 sm:$0xff]  }
  0x7a   :  { %3383 = vmatmul.mubr.msk.bf16.vlgmr.msra.gmra.mxu0 %vm306_vm0, %v167_v28  ;;  %3384 = vmatmul.mubr.msk.bf16.vlgmr.msra.gmra.mxu1 %vm306_vm0, %v167_v28  ;;  %v3857_v45 = vld [vmem:[#allocation6 + $0x2a4] ss:$16 sps:$4 sm:$0xff]   ;;  %v3855_v47 = vld [vmem:[#allocation6 + $0x2a0] ss:$16 sps:$4 sm:$0xff]  }
  0x7b   :  { %409 = vmatpush1.bf16.msra.mxu0 %v3379_v30  ;;  %452 = vmatpush1.bf16.msra.mxu1 %v3381_v31  ;;  %v3860_v48 = vld [vmem:[#allocation6 + $0x84] ss:$16 sps:$4 sm:$0xff]   ;;  %v3858_v50 = vld [vmem:[#allocation6 + $0x80] ss:$16 sps:$4 sm:$0xff]  }
  0x7c   :  { %410 = vmatprep.subr.bf16.mxu0 %v3372_v32  ;;  %453 = vmatprep.subr.bf16.mxu1 %v3374_v33  ;;  %v3863_v49 = vld [vmem:[#allocation6 + $0x284] ss:$16 sps:$4 sm:$0xff]   ;;  %v3861_v51 = vld [vmem:[#allocation6 + $0x280] ss:$16 sps:$4 sm:$0xff]  }
  0x7d   :  { %428 = vmatprep.mubr.bf16.mxu0 %v4555_v0  ;;  %471 = vmatprep.mubr.bf16.mxu1 %v4555_v0  ;;  %v3866_v52 = vld [vmem:[#allocation6 + $0x64] ss:$16 sps:$4 sm:$0xff]   ;;  %v3864_v54 = vld [vmem:[#allocation6 + $0x60] ss:$16 sps:$4 sm:$0xff]  }
  0x7e   :  { %v3869_v53 = vld [vmem:[#allocation6 + $0x264] ss:$16 sps:$4 sm:$0xff]   ;;  %v3867_v55 = vld [vmem:[#allocation6 + $0x260] ss:$16 sps:$4 sm:$0xff]  }
  0x7f   :  { %411 = vmatpush1.bf16.msra.mxu0 %v3371_v34  ;;  %454 = vmatpush1.bf16.msra.mxu1 %v3373_v35  ;;  %v3872_v56 = vld [vmem:[#allocation6 + $0x44] ss:$16 sps:$4 sm:$0xff]   ;;  %v3870_v58 = vld [vmem:[#allocation6 + $0x40] ss:$16 sps:$4 sm:$0xff]  }
  0x80   :  { %2064 = vmatprep.subr.bf16.mxu0 %v3842_v36  ;;  %2107 = vmatprep.subr.bf16.mxu1 %v3845_v37  ;;  %v3875_v57 = vld [vmem:[#allocation6 + $0x244] ss:$16 sps:$4 sm:$0xff]   ;;  %v3873_v59 = vld [vmem:[#allocation6 + $0x240] ss:$16 sps:$4 sm:$0xff]  }
  0x81   :  { %v3878_v60 = vld [vmem:[#allocation6 + $0x24] ss:$16 sps:$4 sm:$0xff]   ;;  %v3876_v62 = vld [vmem:[#allocation6 + $0x20] ss:$16 sps:$4 sm:$0xff]  }
  0x82   :  { %3385 = vmatmul.mubr.msk.bf16.vlgmr.msra.gmra.mxu0 %vm306_vm0, %v167_v28  ;;  %3386 = vmatmul.mubr.msk.bf16.vlgmr.msra.gmra.mxu1 %vm306_vm0, %v167_v28  ;;  %v3881_v61 = vld [vmem:[#allocation6 + $0x224] ss:$16 sps:$4 sm:$0xff]   ;;  %v3879_v63 = vld [vmem:[#allocation6 + $0x220] ss:$16 sps:$4 sm:$0xff]  }
  0x83   :  { %2065 = vmatpush1.bf16.msra.mxu0 %v3840_v38  ;;  %2108 = vmatpush1.bf16.msra.mxu1 %v3843_v39  ;;  %v3884_v0 = vld [vmem:[#allocation6 + $0x4] ss:$16 sps:$4 sm:$0xff]   ;;  %v3882_v2 = vld [vmem:[#allocation6] ss:$16 sps:$4 sm:$0xff]   ;;  %v186_v38 = vlaneseq }
  0x84   :  { %2066 = vmatprep.subr.bf16.mxu0 %v3848_v40  ;;  %2109 = vmatprep.subr.bf16.mxu1 %v3851_v41  ;;  %v3887_v1 = vld [vmem:[#allocation6 + $0x204] ss:$16 sps:$4 sm:$0xff]   ;;  %v3885_v3 = vld [vmem:[#allocation6 + $0x200] ss:$16 sps:$4 sm:$0xff]  }
  0x85   :  { %v3890_v4 = vld [vmem:[#allocation6 + $0x1e4] ss:$16 sps:$4 sm:$0xff]   ;;  %v3888_v6 = vld [vmem:[#allocation6 + $0x1e0] ss:$16 sps:$4 sm:$0xff]   ;;  %v4723_v39 = vshrl.u32 %v186_v38, 7 }
  0x86   :  { %v3893_v5 = vld [vmem:[#allocation6 + $0x3e4] ss:$16 sps:$4 sm:$0xff]   ;;  %v3891_v7 = vld [vmem:[#allocation6 + $0x3e0] ss:$16 sps:$4 sm:$0xff]  }
  0x87   :  { %2067 = vmatpush1.bf16.msra.mxu0 %v3846_v42  ;;  %2110 = vmatpush1.bf16.msra.mxu1 %v3849_v43  ;;  %v3896_v8 = vld [vmem:[#allocation6 + $0x1c4] ss:$16 sps:$4 sm:$0xff]   ;;  %v3894_v10 = vld [vmem:[#allocation6 + $0x1c0] ss:$16 sps:$4 sm:$0xff]   ;;  %v4726_v40 = vsub.s32 1, %v4723_v39  ;;  %v4729_v41 = vsub.s32 0, %v4723_v39 }
  0x88   :  { %2068 = vmatprep.subr.bf16.mxu0 %v3854_v44  ;;  %2111 = vmatprep.subr.bf16.mxu1 %v3857_v45  ;;  %v3899_v9 = vld [vmem:[#allocation6 + $0x3c4] ss:$16 sps:$4 sm:$0xff]   ;;  %v3897_v11 = vld [vmem:[#allocation6 + $0x3c0] ss:$16 sps:$4 sm:$0xff]   ;;  %v200_v42 = vsub.s32 3, %v4723_v39  ;;  %v4732_v43 = vld [vmem:[#allocation4] sm:$0xff] }
  0x89   :  { %v3902_v12 = vld [vmem:[#allocation6 + $0x1a4] ss:$16 sps:$4 sm:$0xff]   ;;  %v3900_v14 = vld [vmem:[#allocation6 + $0x1a0] ss:$16 sps:$4 sm:$0xff]   ;;  %v196_v44 = vsub.s32 2, %v4723_v39 }
  0x8a   :  { %v3905_v13 = vld [vmem:[#allocation6 + $0x3a4] ss:$16 sps:$4 sm:$0xff]   ;;  %v3903_v15 = vld [vmem:[#allocation6 + $0x3a0] ss:$16 sps:$4 sm:$0xff]  }
  0x8b   :  { %2069 = vmatpush1.bf16.msra.mxu0 %v3852_v46  ;;  %2112 = vmatpush1.bf16.msra.mxu1 %v3855_v47  ;;  %v3908_v16 = vld [vmem:[#allocation6 + $0x184] ss:$16 sps:$4 sm:$0xff]   ;;  %v3906_v18 = vld [vmem:[#allocation6 + $0x180] ss:$16 sps:$4 sm:$0xff]   ;;  %v193_v47 = vrot.slane %v4732_v43, %v4726_v40 }
  0x8c   :  { %2070 = vmatprep.subr.bf16.mxu0 %v3860_v48  ;;  %2113 = vmatprep.subr.bf16.mxu1 %v3863_v49  ;;  %v3911_v17 = vld [vmem:[#allocation6 + $0x384] ss:$16 sps:$4 sm:$0xff]   ;;  %v3909_v19 = vld [vmem:[#allocation6 + $0x380] ss:$16 sps:$4 sm:$0xff]   ;;  %v189_v48 = vrot.slane %v4732_v43, %v4729_v41 }
  0x8d   :  { %v3914_v20 = vld [vmem:[#allocation6 + $0x164] ss:$16 sps:$4 sm:$0xff]   ;;  %v3912_v22 = vld [vmem:[#allocation6 + $0x160] ss:$16 sps:$4 sm:$0xff]  }
  0x8e   :  { %v3917_v21 = vld [vmem:[#allocation6 + $0x364] ss:$16 sps:$4 sm:$0xff]   ;;  %v3915_v23 = vld [vmem:[#allocation6 + $0x360] ss:$16 sps:$4 sm:$0xff]  }
  0x8f   :  { %2071 = vmatpush1.bf16.msra.mxu0 %v3858_v50  ;;  %2114 = vmatpush1.bf16.msra.mxu1 %v3861_v51  ;;  %v3920_v24 = vld [vmem:[#allocation6 + $0x144] ss:$16 sps:$4 sm:$0xff]   ;;  %v3918_v26 = vld [vmem:[#allocation6 + $0x140] ss:$16 sps:$4 sm:$0xff]   ;;  %v201_v50 = vrot.slane %v4732_v43, %v200_v42  ;;  %v197_v51 = vrot.slane %v4732_v43, %v196_v44 }
  0x90   :  { %2072 = vmatprep.subr.bf16.mxu0 %v3866_v52  ;;  %2115 = vmatprep.subr.bf16.mxu1 %v3869_v53  ;;  %v3923_v25 = vld [vmem:[#allocation6 + $0x344] ss:$16 sps:$4 sm:$0xff]   ;;  %v3921_v27 = vld [vmem:[#allocation6 + $0x340] ss:$16 sps:$4 sm:$0xff]   ;;  %v208_v53 = vsub.s32 5, %v4723_v39 }
  0x91   :  { %v3926_v28 = vld [vmem:[#allocation6 + $0x124] ss:$16 sps:$4 sm:$0xff]   ;;  %v3924_v30 = vld [vmem:[#allocation6 + $0x120] ss:$16 sps:$4 sm:$0xff]  }
  0x92   :  { %v3929_v29 = vld [vmem:[#allocation6 + $0x324] ss:$16 sps:$4 sm:$0xff]   ;;  %v3927_v31 = vld [vmem:[#allocation6 + $0x320] ss:$16 sps:$4 sm:$0xff]  }
  0x93   :  { %2073 = vmatpush1.bf16.msra.mxu0 %v3864_v54  ;;  %2116 = vmatpush1.bf16.msra.mxu1 %v3867_v55  ;;  %v3932_v32 = vld [vmem:[#allocation6 + $0x104] ss:$16 sps:$4 sm:$0xff]   ;;  %v3930_v34 = vld [vmem:[#allocation6 + $0x100] ss:$16 sps:$4 sm:$0xff]   ;;  %v216_v55 = vsub.s32 7, %v4723_v39 }
  0x94   :  { %2074 = vmatprep.subr.bf16.mxu0 %v3872_v56  ;;  %2117 = vmatprep.subr.bf16.mxu1 %v3875_v57  ;;  %v3935_v33 = vld [vmem:[#allocation6 + $0x304] ss:$16 sps:$4 sm:$0xff]   ;;  %v3933_v35 = vld [vmem:[#allocation6 + $0x300] ss:$16 sps:$4 sm:$0xff]  }
  0x95   :  { %v3938_v36 = vld [vmem:[#allocation6 + $0x4e4] ss:$16 sps:$4 sm:$0xff]  }
  0x96   :  { %v3941_v37 = vld [vmem:[#allocation6 + $0x6e4] ss:$16 sps:$4 sm:$0xff]  }
  0x97   :  { %2075 = vmatpush1.bf16.msra.mxu0 %v3870_v58  ;;  %2118 = vmatpush1.bf16.msra.mxu1 %v3873_v59  ;;  %v3953_v38 = vld [vmem:[#allocation6 + $0x6a4] ss:$16 sps:$4 sm:$0xff]  }
  0x98   :  { %2076 = vmatprep.subr.bf16.mxu0 %v3878_v60  ;;  %2119 = vmatprep.subr.bf16.mxu1 %v3881_v61 }
  0x9b   :  { %2077 = vmatpush1.bf16.msra.mxu0 %v3876_v62  ;;  %2120 = vmatpush1.bf16.msra.mxu1 %v3879_v63 }
  0x9c   :  { %2078 = vmatprep.subr.bf16.mxu0 %v3884_v0  ;;  %2121 = vmatprep.subr.bf16.mxu1 %v3887_v1 }
  0x9f   :  { %2079 = vmatpush1.bf16.msra.mxu0 %v3882_v2  ;;  %2122 = vmatpush1.bf16.msra.mxu1 %v3885_v3  ;;  %v209_v2 = vrot.slane %v4732_v43, %v208_v53  ;;  %v3954_v53 = vld [vmem:[#allocation6 + $0x480] ss:$16 sps:$4 sm:$0xff]  }
  0xa0   :  { %2080 = vmatprep.subr.bf16.mxu0 %v3890_v4  ;;  %2123 = vmatprep.subr.bf16.mxu1 %v3893_v5 }
  0xa3   :  { %2081 = vmatpush2.bf16.msra.mxu0 %v3888_v6  ;;  %2124 = vmatpush2.bf16.msra.mxu1 %v3891_v7  ;;  %v217_v6 = vrot.slane %v4732_v43, %v216_v55  ;;  %v3962_v55 = vld [vmem:[#allocation6 + $0x464] ss:$16 sps:$4 sm:$0xff]  }
  0xa4   :  { %2082 = vmatprep.subr.bf16.mxu0 %v3896_v8  ;;  %2125 = vmatprep.subr.bf16.mxu1 %v3899_v9 }
  0xa7   :  { %2083 = vmatpush2.bf16.msra.mxu0 %v3894_v10  ;;  %2126 = vmatpush2.bf16.msra.mxu1 %v3897_v11 }
  0xa8   :  { %2084 = vmatprep.subr.bf16.mxu0 %v3902_v12  ;;  %2127 = vmatprep.subr.bf16.mxu1 %v3905_v13 }
  0xab   :  { %2085 = vmatpush2.bf16.msra.mxu0 %v3900_v14  ;;  %2128 = vmatpush2.bf16.msra.mxu1 %v3903_v15 }
  0xac   :  { %2086 = vmatprep.subr.bf16.mxu0 %v3908_v16  ;;  %2129 = vmatprep.subr.bf16.mxu1 %v3911_v17  ;;  %v3936_v17 = vld [vmem:[#allocation6 + $0x4e0] ss:$16 sps:$4 sm:$0xff]  }
  0xaf   :  { %2087 = vmatpush2.bf16.msra.mxu0 %v3906_v18  ;;  %2130 = vmatpush2.bf16.msra.mxu1 %v3909_v19 }
  0xb0   :  { %2088 = vmatprep.subr.bf16.mxu0 %v3914_v20  ;;  %2131 = vmatprep.subr.bf16.mxu1 %v3917_v21 }
  0xb3   :  { %2089 = vmatpush2.bf16.msra.mxu0 %v3912_v22  ;;  %2132 = vmatpush2.bf16.msra.mxu1 %v3915_v23  ;;  %v3939_v22 = vld [vmem:[#allocation6 + $0x6e0] ss:$16 sps:$4 sm:$0xff]   ;;  %v3944_v23 = vld [vmem:[#allocation6 + $0x4c4] ss:$16 sps:$4 sm:$0xff]  }
  0xb4   :  { %2090 = vmatprep.subr.bf16.mxu0 %v3920_v24  ;;  %2133 = vmatprep.subr.bf16.mxu1 %v3923_v25 }
  0xb7   :  { %2091 = vmatpush2.bf16.msra.mxu0 %v3918_v26  ;;  %2134 = vmatpush2.bf16.msra.mxu1 %v3921_v27  ;;  %v3947_v27 = vld [vmem:[#allocation6 + $0x6c4] ss:$16 sps:$4 sm:$0xff]  }
  0xb8   :  { %2092 = vmatprep.subr.bf16.mxu0 %v3926_v28  ;;  %2135 = vmatprep.subr.bf16.mxu1 %v3929_v29 }
  0xbb   :  { %2093 = vmatpush2.bf16.msra.mxu0 %v3924_v30  ;;  %2136 = vmatpush2.bf16.msra.mxu1 %v3927_v31  ;;  %v3942_v30 = vld [vmem:[#allocation6 + $0x4c0] ss:$16 sps:$4 sm:$0xff]  }
  0xbc   :  { %2094 = vmatprep.subr.bf16.mxu0 %v3932_v32  ;;  %2137 = vmatprep.subr.bf16.mxu1 %v3935_v33 }
  0xbf   :  { %2095 = vmatpush2.bf16.msra.mxu0 %v3930_v34  ;;  %2138 = vmatpush2.bf16.msra.mxu1 %v3933_v35  ;;  %v3945_v34 = vld [vmem:[#allocation6 + $0x6c0] ss:$16 sps:$4 sm:$0xff]   ;;  %v3950_v35 = vld [vmem:[#allocation6 + $0x4a4] ss:$16 sps:$4 sm:$0xff]  }
  0xc0   :  { %2150 = vmatprep.subr.bf16.mxu0 %v3938_v36  ;;  %2193 = vmatprep.subr.bf16.mxu1 %v3941_v37 }
 0x13a   :  { %v344_v45 = vpop.f32.mrf.mxu0  ;;  %v387_v46 = vpop.f32.mrf.mxu1 }
 0x13b   :  { %v345_v59 = vadd.f32 %v344_v45, %v189_v48  ;;  %v388_v63 = vadd.f32 %v387_v46, %v197_v51 }
 0x13c   :  { %v346_v49 = vpop.f32.mrf.mxu0  ;;  %v389_v52 = vpop.f32.mrf.mxu1 }
 0x13d   :  { %v347_v56 = vadd.f32 %v346_v49, %v193_v47  ;;  %v390_v60 = vadd.f32 %v389_v52, %v201_v50  ;;  %v482_v11 = vmax.f32 %v345_v59, 0.0  ;;  %v484_v15 = vmax.f32 %v388_v63, 0.0  ;;  %v3951_v49 = vld [vmem:[#allocation6 + $0x6a0] ss:$16 sps:$4 sm:$0xff]   ;;  %v3959_v52 = vld [vmem:[#allocation6 + $0x684] ss:$16 sps:$4 sm:$0xff]  }
 0x13e   :  { %v348_v54 = vpop.f32.mrf.mxu0  ;;  %v391_v58 = vpop.f32.mrf.mxu1  ;;  %v3968_v59 = vld [vmem:[#allocation6 + $0x444] ss:$16 sps:$4 sm:$0xff]  }
 0x13f   :  { %v349_v57 = vadd.f32 %v348_v54, %v189_v48  ;;  %v392_v61 = vadd.f32 %v391_v58, %v197_v51  ;;  %v483_v7 = vmax.f32 %v347_v56, 0.0  ;;  %v485_v12 = vmax.f32 %v390_v60, 0.0  ;;  %v3957_v54 = vld [vmem:[#allocation6 + $0x680] ss:$16 sps:$4 sm:$0xff]   ;;  %v3965_v56 = vld [vmem:[#allocation6 + $0x664] ss:$16 sps:$4 sm:$0xff]  }
 0x140   :  { %v350_v62 = vpop.f32.mrf.mxu0  ;;  %v393_v1 = vpop.f32.mrf.mxu1  ;;  %v3963_v58 = vld [vmem:[#allocation6 + $0x660] ss:$16 sps:$4 sm:$0xff]   ;;  %v3971_v60 = vld [vmem:[#allocation6 + $0x644] ss:$16 sps:$4 sm:$0xff]  }
 0x141   :  { %v351_v0 = vadd.f32 %v350_v62, %v193_v47  ;;  %v490_v3 = vmax.f32 %v349_v57, 0.0  ;;  %v394_v4 = vadd.f32 %v393_v1, %v201_v50  ;;  %v492_v8 = vmax.f32 %v392_v61, 0.0  ;;  %v3948_v47 = vld [vmem:[#allocation6 + $0x4a0] ss:$16 sps:$4 sm:$0xff]   ;;  %v3956_v50 = vld [vmem:[#allocation6 + $0x484] ss:$16 sps:$4 sm:$0xff]  }
 0x142   :  { %v4748_v5 = vpop.f32.mrf.mxu0  ;;  %v4751_v10 = vpop.f32.mrf.mxu1  ;;  %v3960_v57 = vld [vmem:[#allocation6 + $0x460] ss:$16 sps:$4 sm:$0xff]   ;;  %v3974_v63 = vld [vmem:[#allocation6 + $0x424] ss:$16 sps:$4 sm:$0xff]  }
 0x143   :  { %v491_v9 = vmax.f32 %v351_v0, 0.0  ;;  %v493_v13 = vmax.f32 %v394_v4, 0.0  ;;  %v4755_v20 = vpack.c.bf16 %v490_v3, %v482_v11  ;;  %v4761_v26 = vpack.c.bf16 %v492_v8, %v484_v15  ;;  %v3966_v61 = vld [vmem:[#allocation6 + $0x440] ss:$16 sps:$4 sm:$0xff]   ;;  %v3977_v0 = vld [vmem:[#allocation6 + $0x624] ss:$16 sps:$4 sm:$0xff]  }
 0x144   :  { %v432_v14 = vpop.f32.mrf.mxu0  ;;  %v475_v19 = vpop.f32.mrf.mxu1  ;;  %v3969_v62 = vld [vmem:[#allocation6 + $0x640] ss:$16 sps:$4 sm:$0xff]   ;;  %v3980_v3 = vld [vmem:[#allocation6 + $0x404] ss:$16 sps:$4 sm:$0xff]  }
 0x145   :  { %v4753_v16 = vpack.c.bf16 %v491_v9, %v483_v7  ;;  %v433_v18 = vadd.f32 %v432_v14, %v209_v2  ;;  %v4757_v21 = vpack.c.bf16 %v493_v13, %v485_v12  ;;  %v476_v25 = vadd.f32 %v475_v19, %v217_v6  ;;  %v3972_v1 = vld [vmem:[#allocation6 + $0x420] ss:$16 sps:$4 sm:$0xff]   ;;  %v3983_v4 = vld [vmem:[#allocation6 + $0x604] ss:$16 sps:$4 sm:$0xff]  }
 0x146   :  { %v4759_v24 = vpop.f32.mrf.mxu0  ;;  %v4764_v28 = vpop.f32.mrf.mxu1  ;;  %v3981_v7 = vld [vmem:[#allocation6 + $0x600] ss:$16 sps:$4 sm:$0xff]   ;;  %v3986_v8 = vld [vmem:[#allocation6 + $0x5e4] ss:$16 sps:$4 sm:$0xff]  }
 0x147   :  { %2096 = vmatprep.mubr.bf16.mxu0 %v4753_v16  ;;  %2139 = vmatprep.mubr.bf16.mxu1 %v4757_v21  ;;  %v487_v31 = vmax.f32 %v433_v18, 0.0  ;;  %v489_v36 = vmax.f32 %v476_v25, 0.0  ;;  %v3989_v9 = vld [vmem:[#allocation6 + $0x7e4] ss:$16 sps:$4 sm:$0xff]   ;;  %v3984_v11 = vld [vmem:[#allocation6 + $0x5e0] ss:$16 sps:$4 sm:$0xff]  }
 0x148   :  { %2097 = vmatmul.mubr.bf16.vlgmr.msra.gmra.mxu0 %v4755_v20  ;;  %v436_v29 = vpop.f32.mrf.mxu0  ;;  %2140 = vmatmul.mubr.bf16.vlgmr.msra.gmra.mxu1 %v4761_v26  ;;  %v479_v33 = vpop.f32.mrf.mxu1  ;;  %v3987_v12 = vld [vmem:[#allocation6 + $0x7e0] ss:$16 sps:$4 sm:$0xff]   ;;  %v3992_v13 = vld [vmem:[#allocation6 + $0x5c4] ss:$16 sps:$4 sm:$0xff]  }
 0x149   :  { %2151 = vmatpush1.bf16.msra.mxu0 %v3936_v17  ;;  %v437_v32 = vadd.f32 %v436_v29, %v209_v2  ;;  %2194 = vmatpush1.bf16.msra.mxu1 %v3939_v22  ;;  %v480_v37 = vadd.f32 %v479_v33, %v217_v6  ;;  %v3975_v2 = vld [vmem:[#allocation6 + $0x620] ss:$16 sps:$4 sm:$0xff]   ;;  %v3995_v14 = vld [vmem:[#allocation6 + $0x7c4] ss:$16 sps:$4 sm:$0xff]  }
 0x14a   :  { %2152 = vmatprep.subr.bf16.mxu0 %v3944_v23  ;;  %2195 = vmatprep.subr.bf16.mxu1 %v3947_v27  ;;  %v3978_v6 = vld [vmem:[#allocation6 + $0x400] ss:$16 sps:$4 sm:$0xff]   ;;  %v3998_v18 = vld [vmem:[#allocation6 + $0x5a4] ss:$16 sps:$4 sm:$0xff]  }
 0x14b   :  { %v495_v45 = vmax.f32 %v437_v32, 0.0  ;;  %v497_v46 = vmax.f32 %v480_v37, 0.0  ;;  %v3990_v15 = vld [vmem:[#allocation6 + $0x5c0] ss:$16 sps:$4 sm:$0xff]   ;;  %v4001_v19 = vld [vmem:[#allocation6 + $0x7a4] ss:$16 sps:$4 sm:$0xff]  }
 0x14c   :  { %v3993_v17 = vld [vmem:[#allocation6 + $0x7c0] ss:$16 sps:$4 sm:$0xff]   ;;  %v4004_v25 = vld [vmem:[#allocation6 + $0x584] ss:$16 sps:$4 sm:$0xff]   ;;  %v212_v37 = vsub.s32 6, %v4723_v39 }
 0x14d   :  { %2153 = vmatpush1.bf16.msra.mxu0 %v3942_v30  ;;  %v4769_v48 = vpack.c.bf16 %v495_v45, %v487_v31  ;;  %2196 = vmatpush1.bf16.msra.mxu1 %v3945_v34  ;;  %v4771_v51 = vpack.c.bf16 %v497_v46, %v489_v36  ;;  %v3996_v22 = vld [vmem:[#allocation6 + $0x5a0] ss:$16 sps:$4 sm:$0xff]   ;;  %v4007_v27 = vld [vmem:[#allocation6 + $0x784] ss:$16 sps:$4 sm:$0xff]   ;;  %v204_v34 = vsub.s32 4, %v4723_v39 }
 0x14e   :  { %2154 = vmatprep.subr.bf16.mxu0 %v3950_v35  ;;  %2197 = vmatprep.subr.bf16.mxu1 %v3953_v38  ;;  %v3999_v23 = vld [vmem:[#allocation6 + $0x7a0] ss:$16 sps:$4 sm:$0xff]   ;;  %v4010_v31 = vld [vmem:[#allocation6 + $0x564] ss:$16 sps:$4 sm:$0xff]  }
 0x14f   :  { %2182 = vmatprep.mubr.bf16.mxu0 %v4769_v48  ;;  %2225 = vmatprep.mubr.bf16.mxu1 %v4771_v51  ;;  %v4002_v29 = vld [vmem:[#allocation6 + $0x580] ss:$16 sps:$4 sm:$0xff]   ;;  %v4013_v32 = vld [vmem:[#allocation6 + $0x764] ss:$16 sps:$4 sm:$0xff]   ;;  %v205_v46 = vrot.slane %v4732_v43, %v204_v34  ;;  %v4076_v34 = vld [vmem:[#allocation6 + $0xc] ss:$16 sps:$4 sm:$0xff]  }
 0x150   :  { %v4005_v30 = vld [vmem:[#allocation6 + $0x780] ss:$16 sps:$4 sm:$0xff]   ;;  %v4016_v36 = vld [vmem:[#allocation6 + $0x544] ss:$16 sps:$4 sm:$0xff]  }
 0x151   :  { %2155 = vmatpush1.bf16.msra.mxu0 %v3948_v47  ;;  %2198 = vmatpush1.bf16.msra.mxu1 %v3951_v49  ;;  %v4008_v33 = vld [vmem:[#allocation6 + $0x560] ss:$16 sps:$4 sm:$0xff]   ;;  %v4019_v38 = vld [vmem:[#allocation6 + $0x744] ss:$16 sps:$4 sm:$0xff]  }
 0x152   :  { %2156 = vmatprep.subr.bf16.mxu0 %v3956_v50  ;;  %2199 = vmatprep.subr.bf16.mxu1 %v3959_v52  ;;  %v4011_v35 = vld [vmem:[#allocation6 + $0x760] ss:$16 sps:$4 sm:$0xff]   ;;  %v4022_v49 = vld [vmem:[#allocation6 + $0x524] ss:$16 sps:$4 sm:$0xff]   ;;  %v213_v50 = vrot.slane %v4732_v43, %v212_v37  ;;  %v4077_v37 = vld [vmem:[#allocation6 + $0x208] ss:$16 sps:$4 sm:$0xff]  }
 0x153   :  { %v4014_v45 = vld [vmem:[#allocation6 + $0x540] ss:$16 sps:$4 sm:$0xff]   ;;  %v4025_v52 = vld [vmem:[#allocation6 + $0x724] ss:$16 sps:$4 sm:$0xff]  }
 0x154   :  { %v4017_v47 = vld [vmem:[#allocation6 + $0x740] ss:$16 sps:$4 sm:$0xff]  }
 0x155   :  { %2157 = vmatpush1.bf16.msra.mxu0 %v3954_v53  ;;  %2200 = vmatpush1.bf16.msra.mxu1 %v3957_v54  ;;  %v4020_v53 = vld [vmem:[#allocation6 + $0x520] ss:$16 sps:$4 sm:$0xff]   ;;  %v431_v54 = vadd.f32 %v4748_v5, %v205_v46  ;;  %v4034_v5 = vld [vmem:[#allocation6 + $0xec] ss:$16 sps:$4 sm:$0xff]  }
 0x156   :  { %2158 = vmatprep.subr.bf16.mxu0 %v3962_v55  ;;  %2201 = vmatprep.subr.bf16.mxu1 %v3965_v56  ;;  %v435_v55 = vadd.f32 %v4759_v24, %v205_v46  ;;  %v4023_v56 = vld [vmem:[#allocation6 + $0x720] ss:$16 sps:$4 sm:$0xff]   ;;  %v4080_v46 = vld [vmem:[#allocation6 + $0x1e8] ss:$16 sps:$4 sm:$0xff]  }
 0x157   :  { %v4026_v43 = vld [vmem:[#allocation6 + $0x500] ss:$16 sps:$4 sm:$0xff]  }
 0x159   :  { %2159 = vmatpush1.bf16.msra.mxu0 %v3960_v57  ;;  %2202 = vmatpush1.bf16.msra.mxu1 %v3963_v58  ;;  %v4028_v57 = vld [vmem:[#allocation6 + $0x504] ss:$16 sps:$4 sm:$0xff]   ;;  %v474_v58 = vadd.f32 %v4751_v10, %v213_v50  ;;  %v4035_v10 = vld [vmem:[#allocation6 + $0x2e8] ss:$16 sps:$4 sm:$0xff]  }
 0x15a   :  { %2160 = vmatprep.subr.bf16.mxu0 %v3968_v59  ;;  %2203 = vmatprep.subr.bf16.mxu1 %v3971_v60  ;;  %v478_v59 = vadd.f32 %v4764_v28, %v213_v50  ;;  %v4031_v60 = vld [vmem:[#allocation6 + $0x704] ss:$16 sps:$4 sm:$0xff]   ;;  %v4091_v50 = vld [vmem:[#allocation6 + $0x3cc] ss:$16 sps:$4 sm:$0xff]  }
 0x15c   :  { %v496_v24 = vmax.f32 %v478_v59, 0.0  ;;  %v4103_v59 = vld [vmem:[#allocation6 + $0x38c] ss:$16 sps:$4 sm:$0xff]  }
 0x15d   :  { %2161 = vmatpush1.bf16.msra.mxu0 %v3966_v61  ;;  %2204 = vmatpush1.bf16.msra.mxu1 %v3969_v62  ;;  %v486_v61 = vmax.f32 %v431_v54, 0.0  ;;  %v494_v62 = vmax.f32 %v435_v55, 0.0  ;;  %v4094_v54 = vld [vmem:[#allocation6 + $0x1ac] ss:$16 sps:$4 sm:$0xff]  }
 0x15e   :  { %2162 = vmatprep.subr.bf16.mxu0 %v3974_v63  ;;  %2205 = vmatprep.subr.bf16.mxu1 %v3977_v0  ;;  %v4029_v63 = vld [vmem:[#allocation6 + $0x700] ss:$16 sps:$4 sm:$0xff]   ;;  %v488_v0 = vmax.f32 %v474_v58, 0.0  ;;  %v4097_v55 = vld [vmem:[#allocation6 + $0x3ac] ss:$16 sps:$4 sm:$0xff]  }
 0x15f   :  { %v4100_v58 = vld [vmem:[#allocation6 + $0x18c] ss:$16 sps:$4 sm:$0xff]  }
 0x160   :  { %v4785_v28 = vpack.c.bf16 %v496_v24, %v488_v0  ;;  %v4112_v0 = vld [vmem:[#allocation6 + $0x14c] ss:$16 sps:$4 sm:$0xff]  }
 0x161   :  { %2163 = vmatpush1.bf16.msra.mxu0 %v3972_v1  ;;  %2206 = vmatpush1.bf16.msra.mxu1 %v3975_v2  ;;  %v4037_v1 = vld [vmem:[#allocation6 + $0x2ec] ss:$16 sps:$4 sm:$0xff]   ;;  %v4032_v2 = vld [vmem:[#allocation6 + $0xe8] ss:$16 sps:$4 sm:$0xff]  }
 0x162   :  { %2164 = vmatprep.subr.bf16.mxu0 %v3980_v3  ;;  %2207 = vmatprep.subr.bf16.mxu1 %v3983_v4  ;;  %v4783_v3 = vpack.c.bf16 %v494_v62, %v486_v61  ;;  %v4040_v4 = vld [vmem:[#allocation6 + $0xcc] ss:$16 sps:$4 sm:$0xff]  }
 0x163   :  { %v4106_v61 = vld [vmem:[#allocation6 + $0x16c] ss:$16 sps:$4 sm:$0xff]  }
 0x164   :  { %v4109_v62 = vld [vmem:[#allocation6 + $0x36c] ss:$16 sps:$4 sm:$0xff]  }
 0x165   :  { %2165 = vmatpush1.bf16.msra.mxu0 %v3978_v6  ;;  %2208 = vmatpush1.bf16.msra.mxu1 %v3981_v7  ;;  %v4043_v6 = vld [vmem:[#allocation6 + $0x2cc] ss:$16 sps:$4 sm:$0xff]   ;;  %v4038_v7 = vld [vmem:[#allocation6 + $0xc8] ss:$16 sps:$4 sm:$0xff]  }
 0x166   :  { %2166 = vmatprep.subr.bf16.mxu0 %v3986_v8  ;;  %2209 = vmatprep.subr.bf16.mxu1 %v3989_v9  ;;  %v4041_v8 = vld [vmem:[#allocation6 + $0x2c8] ss:$16 sps:$4 sm:$0xff]   ;;  %v4046_v9 = vld [vmem:[#allocation6 + $0xac] ss:$16 sps:$4 sm:$0xff]  }
 0x167   :  { %v4115_v24 = vld [vmem:[#allocation6 + $0x34c] ss:$16 sps:$4 sm:$0xff]  }
 0x169   :  { %2167 = vmatpush2.bf16.msra.mxu0 %v3984_v11  ;;  %2210 = vmatpush2.bf16.msra.mxu1 %v3987_v12  ;;  %v4049_v11 = vld [vmem:[#allocation6 + $0x2ac] ss:$16 sps:$4 sm:$0xff]   ;;  %v4044_v12 = vld [vmem:[#allocation6 + $0xa8] ss:$16 sps:$4 sm:$0xff]  }
 0x16a   :  { %2168 = vmatprep.subr.bf16.mxu0 %v3992_v13  ;;  %2211 = vmatprep.subr.bf16.mxu1 %v3995_v14  ;;  %v4047_v13 = vld [vmem:[#allocation6 + $0x2a8] ss:$16 sps:$4 sm:$0xff]   ;;  %v4052_v14 = vld [vmem:[#allocation6 + $0x8c] ss:$16 sps:$4 sm:$0xff]  }
 0x16d   :  { %2169 = vmatpush2.bf16.msra.mxu0 %v3990_v15  ;;  %2212 = vmatpush2.bf16.msra.mxu1 %v3993_v17  ;;  %v4055_v15 = vld [vmem:[#allocation6 + $0x28c] ss:$16 sps:$4 sm:$0xff]   ;;  %v4050_v17 = vld [vmem:[#allocation6 + $0x88] ss:$16 sps:$4 sm:$0xff]  }
 0x16e   :  { %2170 = vmatprep.subr.bf16.mxu0 %v3998_v18  ;;  %2213 = vmatprep.subr.bf16.mxu1 %v4001_v19  ;;  %v4058_v18 = vld [vmem:[#allocation6 + $0x6c] ss:$16 sps:$4 sm:$0xff]  }
 0x16f   :  { %v4061_v19 = vld [vmem:[#allocation6 + $0x26c] ss:$16 sps:$4 sm:$0xff]  }
 0x171   :  { %2171 = vmatpush2.bf16.msra.mxu0 %v3996_v22  ;;  %2214 = vmatpush2.bf16.msra.mxu1 %v3999_v23  ;;  %v4059_v22 = vld [vmem:[#allocation6 + $0x268] ss:$16 sps:$4 sm:$0xff]   ;;  %v4064_v23 = vld [vmem:[#allocation6 + $0x4c] ss:$16 sps:$4 sm:$0xff]  }
 0x172   :  { %2172 = vmatprep.subr.bf16.mxu0 %v4004_v25  ;;  %2215 = vmatprep.subr.bf16.mxu1 %v4007_v27  ;;  %v4067_v25 = vld [vmem:[#allocation6 + $0x24c] ss:$16 sps:$4 sm:$0xff]   ;;  %v4062_v27 = vld [vmem:[#allocation6 + $0x48] ss:$16 sps:$4 sm:$0xff]  }
 0x175   :  { %2173 = vmatpush2.bf16.msra.mxu0 %v4002_v29  ;;  %2216 = vmatpush2.bf16.msra.mxu1 %v4005_v30  ;;  %v4065_v29 = vld [vmem:[#allocation6 + $0x248] ss:$16 sps:$4 sm:$0xff]   ;;  %v4070_v30 = vld [vmem:[#allocation6 + $0x2c] ss:$16 sps:$4 sm:$0xff]  }
 0x176   :  { %2174 = vmatprep.subr.bf16.mxu0 %v4010_v31  ;;  %2217 = vmatprep.subr.bf16.mxu1 %v4013_v32  ;;  %v4073_v31 = vld [vmem:[#allocation6 + $0x22c] ss:$16 sps:$4 sm:$0xff]   ;;  %v4068_v32 = vld [vmem:[#allocation6 + $0x28] ss:$16 sps:$4 sm:$0xff]  }
 0x179   :  { %2175 = vmatpush2.bf16.msra.mxu0 %v4008_v33  ;;  %2218 = vmatpush2.bf16.msra.mxu1 %v4011_v35  ;;  %v4071_v33 = vld [vmem:[#allocation6 + $0x228] ss:$16 sps:$4 sm:$0xff]   ;;  %v4079_v35 = vld [vmem:[#allocation6 + $0x20c] ss:$16 sps:$4 sm:$0xff]  }
 0x17a   :  { %2176 = vmatprep.subr.bf16.mxu0 %v4016_v36  ;;  %2219 = vmatprep.subr.bf16.mxu1 %v4019_v38  ;;  %v4074_v36 = vld [vmem:[#allocation6 + $0x8] ss:$16 sps:$4 sm:$0xff]   ;;  %v4082_v38 = vld [vmem:[#allocation6 + $0x1ec] ss:$16 sps:$4 sm:$0xff]  }
 0x17d   :  { %2177 = vmatpush2.bf16.msra.mxu0 %v4014_v45  ;;  %2220 = vmatpush2.bf16.msra.mxu1 %v4017_v47  ;;  %v4085_v45 = vld [vmem:[#allocation6 + $0x3ec] ss:$16 sps:$4 sm:$0xff]   ;;  %v4083_v47 = vld [vmem:[#allocation6 + $0x3e8] ss:$16 sps:$4 sm:$0xff]  }
 0x17e   :  { %2178 = vmatprep.subr.bf16.mxu0 %v4022_v49  ;;  %2221 = vmatprep.subr.bf16.mxu1 %v4025_v52  ;;  %v4088_v49 = vld [vmem:[#allocation6 + $0x1cc] ss:$16 sps:$4 sm:$0xff]   ;;  %v4086_v52 = vld [vmem:[#allocation6 + $0x1c8] ss:$16 sps:$4 sm:$0xff]  }
 0x181   :  { %2179 = vmatpush2.bf16.msra.mxu0 %v4020_v53  ;;  %2222 = vmatpush2.bf16.msra.mxu1 %v4023_v56  ;;  %v4089_v53 = vld [vmem:[#allocation6 + $0x3c8] ss:$16 sps:$4 sm:$0xff]  }
 0x182   :  { %2180 = vmatprep.subr.bf16.mxu0 %v4028_v57  ;;  %2223 = vmatprep.subr.bf16.mxu1 %v4031_v60  ;;  %v4092_v56 = vld [vmem:[#allocation6 + $0x1a8] ss:$16 sps:$4 sm:$0xff]  }
 0x183   :  { %v4095_v57 = vld [vmem:[#allocation6 + $0x3a8] ss:$16 sps:$4 sm:$0xff]  }
 0x184   :  { %v4098_v60 = vld [vmem:[#allocation6 + $0x188] ss:$16 sps:$4 sm:$0xff]  }
 0x185   :  { %2181 = vmatpush2.bf16.msra.mxu0 %v4026_v43  ;;  %2224 = vmatpush2.bf16.msra.mxu1 %v4029_v63  ;;  %v4101_v43 = vld [vmem:[#allocation6 + $0x388] ss:$16 sps:$4 sm:$0xff]  }
 0x186   :  { %2236 = vmatprep.subr.bf16.mxu0 %v4034_v5  ;;  %2279 = vmatprep.subr.bf16.mxu1 %v4037_v1  ;;  %v4104_v63 = vld [vmem:[#allocation6 + $0x168] ss:$16 sps:$4 sm:$0xff]  }
 0x187   :  { %v4107_v5 = vld [vmem:[#allocation6 + $0x368] ss:$16 sps:$4 sm:$0xff]  }
 0x188   :  { %2183 = vmatmul.mubr.bf16.vlgmr.msra.gmra.mxu0 %v4783_v3  ;;  %2226 = vmatmul.mubr.bf16.vlgmr.msra.gmra.mxu1 %v4785_v28  ;;  %v4110_v1 = vld [vmem:[#allocation6 + $0x148] ss:$16 sps:$4 sm:$0xff]  }
 0x189   :  { %2237 = vmatpush1.bf16.msra.mxu0 %v4032_v2  ;;  %2268 = vmatprep.mubr.bf16.mxu0 %v4753_v16  ;;  %v4053_v16 = vld [vmem:[#allocation6 + $0x288] ss:$16 sps:$4 sm:$0xff]  }
 0x18a   :  { %2280 = vmatpush1.bf16.msra.mxu1 %v4035_v10  ;;  %2311 = vmatprep.mubr.bf16.mxu1 %v4757_v21  ;;  %v4056_v21 = vld [vmem:[#allocation6 + $0x68] ss:$16 sps:$4 sm:$0xff]   ;;  %v4118_v10 = vld [vmem:[#allocation6 + $0x12c] ss:$16 sps:$4 sm:$0xff]  }
 0x18b   :  { %2238 = vmatprep.subr.bf16.mxu0 %v4040_v4  ;;  %2281 = vmatprep.subr.bf16.mxu1 %v4043_v6  ;;  %v4113_v2 = vld [vmem:[#allocation6 + $0x348] ss:$16 sps:$4 sm:$0xff]   ;;  %v4121_v4 = vld [vmem:[#allocation6 + $0x32c] ss:$16 sps:$4 sm:$0xff]  }
 0x18c   :  { %v4116_v6 = vld [vmem:[#allocation6 + $0x128] ss:$16 sps:$4 sm:$0xff]  }
 0x18d   :  { %2239 = vmatpush1.bf16.msra.mxu0 %v4038_v7  ;;  %v4119_v7 = vld [vmem:[#allocation6 + $0x328] ss:$16 sps:$4 sm:$0xff]  }
 0x18e   :  { %2282 = vmatpush1.bf16.msra.mxu1 %v4041_v8  ;;  %2240 = vmatprep.subr.bf16.mxu0 %v4046_v9  ;;  %v4124_v8 = vld [vmem:[#allocation6 + $0x10c] ss:$16 sps:$4 sm:$0xff]  }
 0x18f   :  { %2283 = vmatprep.subr.bf16.mxu1 %v4049_v11  ;;  %v4127_v9 = vld [vmem:[#allocation6 + $0x30c] ss:$16 sps:$4 sm:$0xff]   ;;  %v4122_v11 = vld [vmem:[#allocation6 + $0x108] ss:$16 sps:$4 sm:$0xff]  }
 0x191   :  { %2241 = vmatpush1.bf16.msra.mxu0 %v4044_v12  ;;  %v4125_v12 = vld [vmem:[#allocation6 + $0x308] ss:$16 sps:$4 sm:$0xff]  }
 0x192   :  { %2284 = vmatpush1.bf16.msra.mxu1 %v4047_v13  ;;  %2242 = vmatprep.subr.bf16.mxu0 %v4052_v14  ;;  %v4130_v13 = vld [vmem:[#allocation6 + $0x4ec] ss:$16 sps:$4 sm:$0xff]  }
 0x193   :  { %2285 = vmatprep.subr.bf16.mxu1 %v4055_v15  ;;  %v4133_v14 = vld [vmem:[#allocation6 + $0x6ec] ss:$16 sps:$4 sm:$0xff]   ;;  %v4128_v15 = vld [vmem:[#allocation6 + $0x4e8] ss:$16 sps:$4 sm:$0xff]  }
 0x195   :  { %2243 = vmatpush1.bf16.msra.mxu0 %v4050_v17  ;;  %v4131_v17 = vld [vmem:[#allocation6 + $0x6e8] ss:$16 sps:$4 sm:$0xff]  }
 0x196   :  { %2286 = vmatpush1.bf16.msra.mxu1 %v4053_v16  ;;  %2244 = vmatprep.subr.bf16.mxu0 %v4058_v18  ;;  %v4136_v16 = vld [vmem:[#allocation6 + $0x4cc] ss:$16 sps:$4 sm:$0xff]  }
 0x197   :  { %2287 = vmatprep.subr.bf16.mxu1 %v4061_v19  ;;  %v4139_v18 = vld [vmem:[#allocation6 + $0x6cc] ss:$16 sps:$4 sm:$0xff]   ;;  %v4134_v19 = vld [vmem:[#allocation6 + $0x4c8] ss:$16 sps:$4 sm:$0xff]  }
 0x199   :  { %2245 = vmatpush1.bf16.msra.mxu0 %v4056_v21  ;;  %v4137_v21 = vld [vmem:[#allocation6 + $0x6c8] ss:$16 sps:$4 sm:$0xff]  }
 0x19a   :  { %2288 = vmatpush1.bf16.msra.mxu1 %v4059_v22  ;;  %2246 = vmatprep.subr.bf16.mxu0 %v4064_v23  ;;  %v4142_v22 = vld [vmem:[#allocation6 + $0x4ac] ss:$16 sps:$4 sm:$0xff]  }
 0x19b   :  { %2289 = vmatprep.subr.bf16.mxu1 %v4067_v25  ;;  %v4145_v23 = vld [vmem:[#allocation6 + $0x6ac] ss:$16 sps:$4 sm:$0xff]   ;;  %v4140_v25 = vld [vmem:[#allocation6 + $0x4a8] ss:$16 sps:$4 sm:$0xff]  }
 0x19d   :  { %2247 = vmatpush1.bf16.msra.mxu0 %v4062_v27  ;;  %v4148_v27 = vld [vmem:[#allocation6 + $0x48c] ss:$16 sps:$4 sm:$0xff]  }
 0x19e   :  { %2290 = vmatpush1.bf16.msra.mxu1 %v4065_v29  ;;  %2248 = vmatprep.subr.bf16.mxu0 %v4070_v30  ;;  %v4146_v29 = vld [vmem:[#allocation6 + $0x488] ss:$16 sps:$4 sm:$0xff]   ;;  %v4154_v30 = vld [vmem:[#allocation6 + $0x46c] ss:$16 sps:$4 sm:$0xff]  }
 0x19f   :  { %2291 = vmatprep.subr.bf16.mxu1 %v4073_v31  ;;  %v4157_v31 = vld [vmem:[#allocation6 + $0x66c] ss:$16 sps:$4 sm:$0xff]  }
 0x1a1   :  { %2249 = vmatpush1.bf16.msra.mxu0 %v4068_v32  ;;  %v4155_v32 = vld [vmem:[#allocation6 + $0x668] ss:$16 sps:$4 sm:$0xff]  }
 0x1a2   :  { %2292 = vmatpush1.bf16.msra.mxu1 %v4071_v33  ;;  %2250 = vmatprep.subr.bf16.mxu0 %v4076_v34  ;;  %v4160_v33 = vld [vmem:[#allocation6 + $0x44c] ss:$16 sps:$4 sm:$0xff]  }
 0x1a3   :  { %2293 = vmatprep.subr.bf16.mxu1 %v4079_v35  ;;  %v4163_v34 = vld [vmem:[#allocation6 + $0x64c] ss:$16 sps:$4 sm:$0xff]   ;;  %v4158_v35 = vld [vmem:[#allocation6 + $0x448] ss:$16 sps:$4 sm:$0xff]  }
 0x1a5   :  { %2251 = vmatpush1.bf16.msra.mxu0 %v4074_v36  ;;  %v4161_v36 = vld [vmem:[#allocation6 + $0x648] ss:$16 sps:$4 sm:$0xff]  }
 0x1a6   :  { %2294 = vmatpush1.bf16.msra.mxu1 %v4077_v37  ;;  %2252 = vmatprep.subr.bf16.mxu0 %v4082_v38  ;;  %v4166_v37 = vld [vmem:[#allocation6 + $0x42c] ss:$16 sps:$4 sm:$0xff]  }
 0x1a7   :  { %2295 = vmatprep.subr.bf16.mxu1 %v4085_v45  ;;  %v4169_v38 = vld [vmem:[#allocation6 + $0x62c] ss:$16 sps:$4 sm:$0xff]   ;;  %v4164_v45 = vld [vmem:[#allocation6 + $0x428] ss:$16 sps:$4 sm:$0xff]  }
 0x1a9   :  { %2253 = vmatpush2.bf16.msra.mxu0 %v4080_v46  ;;  %v4167_v46 = vld [vmem:[#allocation6 + $0x628] ss:$16 sps:$4 sm:$0xff]  }
 0x1aa   :  { %2296 = vmatpush2.bf16.msra.mxu1 %v4083_v47  ;;  %2254 = vmatprep.subr.bf16.mxu0 %v4088_v49  ;;  %v4172_v47 = vld [vmem:[#allocation6 + $0x40c] ss:$16 sps:$4 sm:$0xff]  }
 0x1ab   :  { %2297 = vmatprep.subr.bf16.mxu1 %v4091_v50  ;;  %v4175_v49 = vld [vmem:[#allocation6 + $0x60c] ss:$16 sps:$4 sm:$0xff]   ;;  %v4170_v50 = vld [vmem:[#allocation6 + $0x408] ss:$16 sps:$4 sm:$0xff]  }
 0x1ad   :  { %2255 = vmatpush2.bf16.msra.mxu0 %v4086_v52  ;;  %v4173_v52 = vld [vmem:[#allocation6 + $0x608] ss:$16 sps:$4 sm:$0xff]  }
 0x1ae   :  { %2298 = vmatpush2.bf16.msra.mxu1 %v4089_v53  ;;  %2256 = vmatprep.subr.bf16.mxu0 %v4094_v54  ;;  %v4178_v53 = vld [vmem:[#allocation6 + $0x5ec] ss:$16 sps:$4 sm:$0xff]  }
 0x1af   :  { %2299 = vmatprep.subr.bf16.mxu1 %v4097_v55  ;;  %v4181_v54 = vld [vmem:[#allocation6 + $0x7ec] ss:$16 sps:$4 sm:$0xff]   ;;  %v4176_v55 = vld [vmem:[#allocation6 + $0x5e8] ss:$16 sps:$4 sm:$0xff]  }
 0x1b1   :  { %2257 = vmatpush2.bf16.msra.mxu0 %v4092_v56  ;;  %v4179_v56 = vld [vmem:[#allocation6 + $0x7e8] ss:$16 sps:$4 sm:$0xff]  }
 0x1b2   :  { %2300 = vmatpush2.bf16.msra.mxu1 %v4095_v57  ;;  %2258 = vmatprep.subr.bf16.mxu0 %v4100_v58  ;;  %v4184_v57 = vld [vmem:[#allocation6 + $0x5cc] ss:$16 sps:$4 sm:$0xff]  }
 0x1b3   :  { %2301 = vmatprep.subr.bf16.mxu1 %v4103_v59  ;;  %v4187_v58 = vld [vmem:[#allocation6 + $0x7cc] ss:$16 sps:$4 sm:$0xff]   ;;  %v4182_v59 = vld [vmem:[#allocation6 + $0x5c8] ss:$16 sps:$4 sm:$0xff]  }
 0x1b5   :  { %2259 = vmatpush2.bf16.msra.mxu0 %v4098_v60  ;;  %v4185_v60 = vld [vmem:[#allocation6 + $0x7c8] ss:$16 sps:$4 sm:$0xff]  }
 0x1b6   :  { %2302 = vmatpush2.bf16.msra.mxu1 %v4101_v43  ;;  %2260 = vmatprep.subr.bf16.mxu0 %v4106_v61  ;;  %v4190_v43 = vld [vmem:[#allocation6 + $0x5ac] ss:$16 sps:$4 sm:$0xff]  }
 0x1b7   :  { %2303 = vmatprep.subr.bf16.mxu1 %v4109_v62  ;;  %v4193_v61 = vld [vmem:[#allocation6 + $0x7ac] ss:$16 sps:$4 sm:$0xff]   ;;  %v4188_v62 = vld [vmem:[#allocation6 + $0x5a8] ss:$16 sps:$4 sm:$0xff]  }
 0x1b9   :  { %2261 = vmatpush2.bf16.msra.mxu0 %v4104_v63  ;;  %v4191_v63 = vld [vmem:[#allocation6 + $0x7a8] ss:$16 sps:$4 sm:$0xff]  }
 0x1ba   :  { %2304 = vmatpush2.bf16.msra.mxu1 %v4107_v5  ;;  %2262 = vmatprep.subr.bf16.mxu0 %v4112_v0  ;;  %v4196_v5 = vld [vmem:[#allocation6 + $0x58c] ss:$16 sps:$4 sm:$0xff]  }
 0x1bb   :  { %2305 = vmatprep.subr.bf16.mxu1 %v4115_v24  ;;  %v4199_v0 = vld [vmem:[#allocation6 + $0x78c] ss:$16 sps:$4 sm:$0xff]   ;;  %v4194_v24 = vld [vmem:[#allocation6 + $0x588] ss:$16 sps:$4 sm:$0xff]  }
 0x1bd   :  { %2263 = vmatpush2.bf16.msra.mxu0 %v4110_v1  ;;  %v4197_v1 = vld [vmem:[#allocation6 + $0x788] ss:$16 sps:$4 sm:$0xff]  }
 0x1be   :  { %2306 = vmatpush2.bf16.msra.mxu1 %v4113_v2  ;;  %2264 = vmatprep.subr.bf16.mxu0 %v4118_v10  ;;  %v4202_v2 = vld [vmem:[#allocation6 + $0x56c] ss:$16 sps:$4 sm:$0xff]  }
 0x1bf   :  { %2307 = vmatprep.subr.bf16.mxu1 %v4121_v4  ;;  %v4205_v10 = vld [vmem:[#allocation6 + $0x76c] ss:$16 sps:$4 sm:$0xff]   ;;  %v4200_v4 = vld [vmem:[#allocation6 + $0x568] ss:$16 sps:$4 sm:$0xff]  }
 0x1c1   :  { %2265 = vmatpush2.bf16.msra.mxu0 %v4116_v6  ;;  %v4203_v6 = vld [vmem:[#allocation6 + $0x768] ss:$16 sps:$4 sm:$0xff]  }
 0x1c2   :  { %2308 = vmatpush2.bf16.msra.mxu1 %v4119_v7  ;;  %2266 = vmatprep.subr.bf16.mxu0 %v4124_v8  ;;  %v4208_v7 = vld [vmem:[#allocation6 + $0x54c] ss:$16 sps:$4 sm:$0xff]  }
 0x1c3   :  { %2309 = vmatprep.subr.bf16.mxu1 %v4127_v9  ;;  %v4211_v8 = vld [vmem:[#allocation6 + $0x74c] ss:$16 sps:$4 sm:$0xff]   ;;  %v4206_v9 = vld [vmem:[#allocation6 + $0x548] ss:$16 sps:$4 sm:$0xff]  }
 0x1c5   :  { %2267 = vmatpush2.bf16.msra.mxu0 %v4122_v11  ;;  %v4209_v11 = vld [vmem:[#allocation6 + $0x748] ss:$16 sps:$4 sm:$0xff]  }
 0x1c6   :  { %2310 = vmatpush2.bf16.msra.mxu1 %v4125_v12  ;;  %2322 = vmatprep.subr.bf16.mxu0 %v4130_v13  ;;  %v4214_v12 = vld [vmem:[#allocation6 + $0x52c] ss:$16 sps:$4 sm:$0xff]  }
 0x1c7   :  { %2365 = vmatprep.subr.bf16.mxu1 %v4133_v14  ;;  %v4217_v13 = vld [vmem:[#allocation6 + $0x72c] ss:$16 sps:$4 sm:$0xff]   ;;  %v4212_v14 = vld [vmem:[#allocation6 + $0x528] ss:$16 sps:$4 sm:$0xff]  }
 0x1c8   :  { %2269 = vmatmul.mubr.bf16.vlgmr.msra.gmra.mxu0 %v4755_v20  ;;  %v4143_v20 = vld [vmem:[#allocation6 + $0x6a8] ss:$16 sps:$4 sm:$0xff]  }
 0x1c9   :  { %2312 = vmatmul.mubr.bf16.vlgmr.msra.gmra.mxu1 %v4761_v26  ;;  %2323 = vmatpush1.bf16.msra.mxu0 %v4128_v15  ;;  %v4151_v26 = vld [vmem:[#allocation6 + $0x68c] ss:$16 sps:$4 sm:$0xff]   ;;  %v4215_v15 = vld [vmem:[#allocation6 + $0x728] ss:$16 sps:$4 sm:$0xff]  }
 0x1ca   :  { %2354 = vmatprep.mubr.bf16.mxu0 %v4769_v48  ;;  %2366 = vmatpush1.bf16.msra.mxu1 %v4131_v17  ;;  %v4149_v48 = vld [vmem:[#allocation6 + $0x688] ss:$16 sps:$4 sm:$0xff]   ;;  %v4220_v17 = vld [vmem:[#allocation6 + $0x50c] ss:$16 sps:$4 sm:$0xff]  }
 0x1cb   :  { %2397 = vmatprep.mubr.bf16.mxu1 %v4771_v51  ;;  %2324 = vmatprep.subr.bf16.mxu0 %v4136_v16  ;;  %v4152_v51 = vld [vmem:[#allocation6 + $0x468] ss:$16 sps:$4 sm:$0xff]   ;;  %v4223_v16 = vld [vmem:[#allocation6 + $0x70c] ss:$16 sps:$4 sm:$0xff]  }
 0x1cc   :  { %2367 = vmatprep.subr.bf16.mxu1 %v4139_v18  ;;  %v4218_v18 = vld [vmem:[#allocation6 + $0x508] ss:$16 sps:$4 sm:$0xff]  }
 0x1cd   :  { %2325 = vmatpush1.bf16.msra.mxu0 %v4134_v19  ;;  %v4221_v19 = vld [vmem:[#allocation6 + $0x708] ss:$16 sps:$4 sm:$0xff]  }
 0x1ce   :  { %2368 = vmatpush1.bf16.msra.mxu1 %v4137_v21  ;;  %2326 = vmatprep.subr.bf16.mxu0 %v4142_v22  ;;  %v4226_v21 = vld [vmem:[#allocation9 + $0x74] ss:$8 sps:$4 sm:$0xff]   ;;  %v4224_v22 = vld [vmem:[#allocation9 + $0x70] ss:$8 sps:$4 sm:$0xff]  }
 0x1cf   :  { %2369 = vmatprep.subr.bf16.mxu1 %v4145_v23  ;;  %v4229_v23 = vld [vmem:[#allocation9 + $0x64] ss:$8 sps:$4 sm:$0xff]  }
 0x1d1   :  { %2327 = vmatpush1.bf16.msra.mxu0 %v4140_v25  ;;  %v4227_v25 = vld [vmem:[#allocation9 + $0x60] ss:$8 sps:$4 sm:$0xff]  }
 0x1d2   :  { %2370 = vmatpush1.bf16.msra.mxu1 %v4143_v20  ;;  %2328 = vmatprep.subr.bf16.mxu0 %v4148_v27  ;;  %v4232_v20 = vld [vmem:[#allocation9 + $0x54] ss:$8 sps:$4 sm:$0xff]   ;;  %v4230_v27 = vld [vmem:[#allocation9 + $0x50] ss:$8 sps:$4 sm:$0xff]  }
 0x1d3   :  { %2371 = vmatprep.subr.bf16.mxu1 %v4151_v26  ;;  %v4235_v26 = vld [vmem:[#allocation9 + $0x44] ss:$8 sps:$4 sm:$0xff]  }
 0x1d5   :  { %2329 = vmatpush1.bf16.msra.mxu0 %v4146_v29  ;;  %v4233_v29 = vld [vmem:[#allocation9 + $0x40] ss:$8 sps:$4 sm:$0xff]  }
 0x1d6   :  { %2372 = vmatpush1.bf16.msra.mxu1 %v4149_v48  ;;  %2330 = vmatprep.subr.bf16.mxu0 %v4154_v30  ;;  %v4272_v48 = vld [vmem:[#allocation9 + $0x170] ss:$8 sps:$4 sm:$0xff]   ;;  %v4274_v30 = vld [vmem:[#allocation9 + $0x174] ss:$8 sps:$4 sm:$0xff]  }
 0x1d7   :  { %2373 = vmatprep.subr.bf16.mxu1 %v4157_v31  ;;  %v4238_v31 = vld [vmem:[#allocation9 + $0x34] ss:$8 sps:$4 sm:$0xff]  }
 0x1d9   :  { %2331 = vmatpush1.bf16.msra.mxu0 %v4152_v51  ;;  %v4277_v51 = vld [vmem:[#allocation9 + $0x164] ss:$8 sps:$4 sm:$0xff]  }
 0x1da   :  { %2374 = vmatpush1.bf16.msra.mxu1 %v4155_v32  ;;  %2332 = vmatprep.subr.bf16.mxu0 %v4160_v33  ;;  %v4280_v32 = vld [vmem:[#allocation9 + $0x154] ss:$8 sps:$4 sm:$0xff]   ;;  %v4241_v33 = vld [vmem:[#allocation9 + $0x24] ss:$8 sps:$4 sm:$0xff]  }
 0x1db   :  { %2375 = vmatprep.subr.bf16.mxu1 %v4163_v34  ;;  %v4278_v34 = vld [vmem:[#allocation9 + $0x150] ss:$8 sps:$4 sm:$0xff]  }
 0x1dd   :  { %2333 = vmatpush1.bf16.msra.mxu0 %v4158_v35  ;;  %v4239_v35 = vld [vmem:[#allocation9 + $0x20] ss:$8 sps:$4 sm:$0xff]  }
 0x1de   :  { %2376 = vmatpush1.bf16.msra.mxu1 %v4161_v36  ;;  %2334 = vmatprep.subr.bf16.mxu0 %v4166_v37  ;;  %v4283_v36 = vld [vmem:[#allocation9 + $0x144] ss:$8 sps:$4 sm:$0xff]   ;;  %v4244_v37 = vld [vmem:[#allocation9 + $0x14] ss:$8 sps:$4 sm:$0xff]  }
 0x1df   :  { %2377 = vmatprep.subr.bf16.mxu1 %v4169_v38  ;;  %v4281_v38 = vld [vmem:[#allocation9 + $0x140] ss:$8 sps:$4 sm:$0xff]  }
 0x1e1   :  { %2335 = vmatpush1.bf16.msra.mxu0 %v4164_v45  ;;  %v4242_v45 = vld [vmem:[#allocation9 + $0x10] ss:$8 sps:$4 sm:$0xff]  }
 0x1e2   :  { %2378 = vmatpush1.bf16.msra.mxu1 %v4167_v46  ;;  %2336 = vmatprep.subr.bf16.mxu0 %v4172_v47  ;;  %v4286_v46 = vld [vmem:[#allocation9 + $0x134] ss:$8 sps:$4 sm:$0xff]   ;;  %v4247_v47 = vld [vmem:[#allocation9 + $0x4] ss:$8 sps:$4 sm:$0xff]  }
 0x1e3   :  { %2379 = vmatprep.subr.bf16.mxu1 %v4175_v49  ;;  %v4284_v49 = vld [vmem:[#allocation9 + $0x130] ss:$8 sps:$4 sm:$0xff]  }
 0x1e5   :  { %2337 = vmatpush1.bf16.msra.mxu0 %v4170_v50  ;;  %v4245_v50 = vld [vmem:[#allocation9] ss:$8 sps:$4 sm:$0xff]  }
 0x1e6   :  { %2380 = vmatpush1.bf16.msra.mxu1 %v4173_v52  ;;  %2338 = vmatprep.subr.bf16.mxu0 %v4178_v53  ;;  %v4289_v52 = vld [vmem:[#allocation9 + $0x124] ss:$8 sps:$4 sm:$0xff]   ;;  %v4250_v53 = vld [vmem:[#allocation9 + $0xf4] ss:$8 sps:$4 sm:$0xff]  }
 0x1e7   :  { %2381 = vmatprep.subr.bf16.mxu1 %v4181_v54  ;;  %v4287_v54 = vld [vmem:[#allocation9 + $0x120] ss:$8 sps:$4 sm:$0xff]  }
 0x1e9   :  { %2339 = vmatpush2.bf16.msra.mxu0 %v4176_v55  ;;  %v4248_v55 = vld [vmem:[#allocation9 + $0xf0] ss:$8 sps:$4 sm:$0xff]  }
 0x1ea   :  { %2382 = vmatpush2.bf16.msra.mxu1 %v4179_v56  ;;  %2340 = vmatprep.subr.bf16.mxu0 %v4184_v57  ;;  %v4292_v56 = vld [vmem:[#allocation9 + $0x114] ss:$8 sps:$4 sm:$0xff]   ;;  %v4253_v57 = vld [vmem:[#allocation9 + $0xe4] ss:$8 sps:$4 sm:$0xff]  }
 0x1eb   :  { %2383 = vmatprep.subr.bf16.mxu1 %v4187_v58  ;;  %v4290_v58 = vld [vmem:[#allocation9 + $0x110] ss:$8 sps:$4 sm:$0xff]  }
 0x1ed   :  { %2341 = vmatpush2.bf16.msra.mxu0 %v4182_v59  ;;  %v4251_v59 = vld [vmem:[#allocation9 + $0xe0] ss:$8 sps:$4 sm:$0xff]  }
 0x1ee   :  { %2384 = vmatpush2.bf16.msra.mxu1 %v4185_v60  ;;  %2342 = vmatprep.subr.bf16.mxu0 %v4190_v43  ;;  %v4295_v60 = vld [vmem:[#allocation9 + $0x104] ss:$8 sps:$4 sm:$0xff]   ;;  %v4256_v43 = vld [vmem:[#allocation9 + $0xd4] ss:$8 sps:$4 sm:$0xff]  }
 0x1ef   :  { %2385 = vmatprep.subr.bf16.mxu1 %v4193_v61  ;;  %v4293_v61 = vld [vmem:[#allocation9 + $0x100] ss:$8 sps:$4 sm:$0xff]  }
 0x1f1   :  { %2343 = vmatpush2.bf16.msra.mxu0 %v4188_v62  ;;  %v4254_v62 = vld [vmem:[#allocation9 + $0xd0] ss:$8 sps:$4 sm:$0xff]  }
 0x1f2   :  { %2386 = vmatpush2.bf16.msra.mxu1 %v4191_v63  ;;  %2344 = vmatprep.subr.bf16.mxu0 %v4196_v5  ;;  %v4298_v63 = vld [vmem:[#allocation9 + $0x1f4] ss:$8 sps:$4 sm:$0xff]   ;;  %v4259_v5 = vld [vmem:[#allocation9 + $0xc4] ss:$8 sps:$4 sm:$0xff]  }
 0x1f3   :  { %2387 = vmatprep.subr.bf16.mxu1 %v4199_v0  ;;  %v4296_v0 = vld [vmem:[#allocation9 + $0x1f0] ss:$8 sps:$4 sm:$0xff]  }
 0x1f5   :  { %2345 = vmatpush2.bf16.msra.mxu0 %v4194_v24  ;;  %v4257_v24 = vld [vmem:[#allocation9 + $0xc0] ss:$8 sps:$4 sm:$0xff]  }
 0x1f6   :  { %2388 = vmatpush2.bf16.msra.mxu1 %v4197_v1  ;;  %2346 = vmatprep.subr.bf16.mxu0 %v4202_v2  ;;  %v4301_v1 = vld [vmem:[#allocation9 + $0x1e4] ss:$8 sps:$4 sm:$0xff]   ;;  %v4262_v2 = vld [vmem:[#allocation9 + $0xb4] ss:$8 sps:$4 sm:$0xff]  }
 0x1f7   :  { %2389 = vmatprep.subr.bf16.mxu1 %v4205_v10  ;;  %v4299_v10 = vld [vmem:[#allocation9 + $0x1e0] ss:$8 sps:$4 sm:$0xff]  }
 0x1f9   :  { %2347 = vmatpush2.bf16.msra.mxu0 %v4200_v4  ;;  %v4260_v4 = vld [vmem:[#allocation9 + $0xb0] ss:$8 sps:$4 sm:$0xff]  }
 0x1fa   :  { %2390 = vmatpush2.bf16.msra.mxu1 %v4203_v6  ;;  %2348 = vmatprep.subr.bf16.mxu0 %v4208_v7  ;;  %v4304_v6 = vld [vmem:[#allocation9 + $0x1d4] ss:$8 sps:$4 sm:$0xff]   ;;  %v4265_v7 = vld [vmem:[#allocation9 + $0xa4] ss:$8 sps:$4 sm:$0xff]  }
 0x1fb   :  { %2391 = vmatprep.subr.bf16.mxu1 %v4211_v8  ;;  %v4302_v8 = vld [vmem:[#allocation9 + $0x1d0] ss:$8 sps:$4 sm:$0xff]  }
 0x1fd   :  { %2349 = vmatpush2.bf16.msra.mxu0 %v4206_v9  ;;  %v4263_v9 = vld [vmem:[#allocation9 + $0xa0] ss:$8 sps:$4 sm:$0xff]  }
 0x1fe   :  { %2392 = vmatpush2.bf16.msra.mxu1 %v4209_v11  ;;  %2350 = vmatprep.subr.bf16.mxu0 %v4214_v12  ;;  %v4307_v11 = vld [vmem:[#allocation9 + $0x1c4] ss:$8 sps:$4 sm:$0xff]  }
 0x1ff   :  { %2393 = vmatprep.subr.bf16.mxu1 %v4217_v13  ;;  %v4268_v13 = vld [vmem:[#allocation9 + $0x94] ss:$8 sps:$4 sm:$0xff]  }
 0x201   :  { %2351 = vmatpush2.bf16.msra.mxu0 %v4212_v14 }
 0x202   :  { %2394 = vmatpush2.bf16.msra.mxu1 %v4215_v15  ;;  %2352 = vmatprep.subr.bf16.mxu0 %v4220_v17  ;;  %v4305_v15 = vld [vmem:[#allocation9 + $0x1c0] ss:$8 sps:$4 sm:$0xff]   ;;  %v4266_v17 = vld [vmem:[#allocation9 + $0x90] ss:$8 sps:$4 sm:$0xff]  }
 0x203   :  { %2395 = vmatprep.subr.bf16.mxu1 %v4223_v16 }
 0x205   :  { %2353 = vmatpush2.bf16.msra.mxu0 %v4218_v18  ;;  %v4271_v18 = vld [vmem:[#allocation9 + $0x84] ss:$8 sps:$4 sm:$0xff]  }
 0x206   :  { %2396 = vmatpush2.bf16.msra.mxu1 %v4221_v19  ;;  %2816 = vmatprep.subr.bf16.mxu0 %v4226_v21  ;;  %v4797_v19 = vld [vmem:[#allocation7] sm:$0xf] }
 0x207   :  { %2859 = vmatprep.subr.bf16.mxu1 %v4274_v30 }
 0x208   :  { %2355 = vmatmul.mubr.bf16.vlgmr.msra.gmra.mxu0 %v4783_v3  ;;  %v4275_v3 = vld [vmem:[#allocation9 + $0x160] ss:$8 sps:$4 sm:$0xff]   ;;  %v2098_v12 = vpop.f32.mrf.mxu0  ;;  %v2141_v14 = vpop.f32.mrf.mxu1 }
 0x209   :  { %2398 = vmatmul.mubr.bf16.vlgmr.msra.gmra.mxu1 %v4785_v28  ;;  %2817 = vmatpush1.bf16.msra.mxu0 %v4224_v22  ;;  %v4236_v28 = vld [vmem:[#allocation9 + $0x30] ss:$8 sps:$4 sm:$0xff]   ;;  %v771_v22 = vrot.slane %v4797_v19, %v4726_v40 }
 0x20a   :  { %2818 = vmatprep.subr.bf16.mxu0 %v4229_v23  ;;  %2860 = vmatpush1.bf16.msra.mxu1 %v4272_v48  ;;  %v2100_v16 = vpop.f32.mrf.mxu0  ;;  %v2143_v21 = vpop.f32.mrf.mxu1  ;;  %v4269_v23 = vld [vmem:[#allocation9 + $0x80] ss:$8 sps:$4 sm:$0xff]  }
 0x20b   :  { %2861 = vmatprep.subr.bf16.mxu1 %v4277_v51 }
 0x20d   :  { %2819 = vmatpush1.bf16.msra.mxu0 %v4227_v25  ;;  %v767_v25 = vrot.slane %v4797_v19, %v4729_v41 }
 0x20e   :  { %2820 = vmatprep.subr.bf16.mxu0 %v4232_v20  ;;  %2862 = vmatpush1.bf16.msra.mxu1 %v4275_v3  ;;  %v2102_v20 = vpop.f32.mrf.mxu0  ;;  %v4310_v3 = vld [vmem:[#allocation9 + $0x1b4] ss:$8 sps:$4 sm:$0xff]  }
 0x20f   :  { %2863 = vmatprep.subr.bf16.mxu1 %v4280_v32  ;;  %v2103_v30 = vadd.f32 %v2102_v20, %v767_v25 }
 0x210   :  { %v2104_v48 = vpop.f32.mrf.mxu0 }
 0x211   :  { %2821 = vmatpush1.bf16.msra.mxu0 %v4230_v27  ;;  %v2145_v27 = vpop.f32.mrf.mxu1  ;;  %v2105_v32 = vadd.f32 %v2104_v48, %v771_v22 }
 0x212   :  { %2822 = vmatprep.subr.bf16.mxu0 %v4235_v26  ;;  %2864 = vmatpush1.bf16.msra.mxu1 %v4278_v34  ;;  %v2101_v26 = vadd.f32 %v2100_v16, %v771_v22  ;;  %v4308_v34 = vld [vmem:[#allocation9 + $0x1b0] ss:$8 sps:$4 sm:$0xff]  }
 0x213   :  { %2865 = vmatprep.subr.bf16.mxu1 %v4283_v36 }
 0x215   :  { %2823 = vmatpush1.bf16.msra.mxu0 %v4233_v29  ;;  %v2099_v29 = vadd.f32 %v2098_v12, %v767_v25  ;;  %v4325_v12 = vld [vmem:[#allocation12 + $0x28] sm:$0xff]   ;;  %v775_v25 = vrot.slane %v4797_v19, %v196_v44 }
 0x216   :  { %2824 = vmatprep.subr.bf16.mxu0 %v4238_v31  ;;  %2866 = vmatpush1.bf16.msra.mxu1 %v4281_v38  ;;  %v2147_v31 = vpop.f32.mrf.mxu1 }
 0x217   :  { %2867 = vmatprep.subr.bf16.mxu1 %v4286_v46 }
 0x219   :  { %2825 = vmatpush1.bf16.msra.mxu0 %v4236_v28  ;;  %v2144_v28 = vadd.f32 %v2143_v21, %v2101_v26 }
 0x21a   :  { %2826 = vmatprep.subr.bf16.mxu0 %v4241_v33  ;;  %2868 = vmatpush1.bf16.msra.mxu1 %v4284_v49  ;;  %v4313_v49 = vld [vmem:[#allocation9 + $0x1a4] ss:$8 sps:$4 sm:$0xff]  }
 0x21b   :  { %2869 = vmatprep.subr.bf16.mxu1 %v4289_v52 }
 0x21d   :  { %2827 = vmatpush1.bf16.msra.mxu0 %v4239_v35  ;;  %v2142_v35 = vadd.f32 %v2141_v14, %v2099_v29  ;;  %v4327_v14 = vld [vmem:[#allocation12 + $0x20] sm:$0xff]  }
 0x21e   :  { %2828 = vmatprep.subr.bf16.mxu0 %v4244_v37  ;;  %2870 = vmatpush1.bf16.msra.mxu1 %v4287_v54  ;;  %v2146_v37 = vadd.f32 %v2145_v27, %v2103_v30  ;;  %v4311_v54 = vld [vmem:[#allocation9 + $0x1a0] ss:$8 sps:$4 sm:$0xff]  }
 0x21f   :  { %2871 = vmatprep.subr.bf16.mxu1 %v4292_v56 }
 0x221   :  { %2829 = vmatpush1.bf16.msra.mxu0 %v4242_v45 }
 0x222   :  { %2830 = vmatprep.subr.bf16.mxu0 %v4247_v47  ;;  %2872 = vmatpush1.bf16.msra.mxu1 %v4290_v58 }
 0x223   :  { %2873 = vmatprep.subr.bf16.mxu1 %v4295_v60 }
 0x225   :  { %2831 = vmatpush1.bf16.msra.mxu0 %v4245_v50  ;;  %v2148_v50 = vadd.f32 %v2147_v31, %v2105_v32 }
 0x226   :  { %2832 = vmatprep.subr.bf16.mxu0 %v4250_v53  ;;  %2874 = vmatpush1.bf16.msra.mxu1 %v4293_v61 }
 0x227   :  { %2875 = vmatprep.subr.bf16.mxu1 %v4298_v63 }
 0x229   :  { %2833 = vmatpush2.bf16.msra.mxu0 %v4248_v55 }
 0x22a   :  { %2834 = vmatprep.subr.bf16.mxu0 %v4253_v57  ;;  %2876 = vmatpush2.bf16.msra.mxu1 %v4296_v0 }
 0x22b   :  { %2877 = vmatprep.subr.bf16.mxu1 %v4301_v1  ;;  %v4319_v1 = vld [vmem:[#allocation9 + $0x184] ss:$8 sps:$4 sm:$0xff]  }
 0x22d   :  { %2835 = vmatpush2.bf16.msra.mxu0 %v4251_v59 }
 0x22e   :  { %2836 = vmatprep.subr.bf16.mxu0 %v4256_v43  ;;  %2878 = vmatpush2.bf16.msra.mxu1 %v4299_v10  ;;  %v4316_v43 = vld [vmem:[#allocation9 + $0x194] ss:$8 sps:$4 sm:$0xff]   ;;  %v4317_v10 = vld [vmem:[#allocation9 + $0x180] ss:$8 sps:$4 sm:$0xff]  }
 0x22f   :  { %2879 = vmatprep.subr.bf16.mxu1 %v4304_v6  ;;  %v4320_v6 = vld [vmem:[#allocation12 + $0x78] sm:$0xff]  }
 0x231   :  { %2837 = vmatpush2.bf16.msra.mxu0 %v4254_v62  ;;  %v4314_v62 = vld [vmem:[#allocation9 + $0x190] ss:$8 sps:$4 sm:$0xff]  }
 0x232   :  { %2838 = vmatprep.subr.bf16.mxu0 %v4259_v5  ;;  %2880 = vmatpush2.bf16.msra.mxu1 %v4302_v8  ;;  %v4322_v8 = vld [vmem:[#allocation12 + $0x70] sm:$0xff]  }
 0x233   :  { %2881 = vmatprep.subr.bf16.mxu1 %v4307_v11  ;;  %v4324_v11 = vld [vmem:[#allocation12 + $0x68] sm:$0xff]  }
 0x235   :  { %2839 = vmatpush2.bf16.msra.mxu0 %v4257_v24 }
 0x236   :  { %2840 = vmatprep.subr.bf16.mxu0 %v4262_v2  ;;  %2882 = vmatpush2.bf16.msra.mxu1 %v4305_v15  ;;  %v4328_v15 = vld [vmem:[#allocation12 + $0x58] sm:$0xff]  }
 0x237   :  { %2883 = vmatprep.subr.bf16.mxu1 %v4310_v3 }
 0x239   :  { %2841 = vmatpush2.bf16.msra.mxu0 %v4260_v4 }
 0x23a   :  { %2842 = vmatprep.subr.bf16.mxu0 %v4265_v7  ;;  %2884 = vmatpush2.bf16.msra.mxu1 %v4308_v34  ;;  %v4321_v7 = vld [vmem:[#allocation12 + $0x38] sm:$0xff]  }
 0x23b   :  { %2885 = vmatprep.subr.bf16.mxu1 %v4313_v49 }
 0x23d   :  { %2843 = vmatpush2.bf16.msra.mxu0 %v4263_v9  ;;  %v4323_v9 = vld [vmem:[#allocation12 + $0x30] sm:$0xff]  }
 0x23e   :  { %2844 = vmatprep.subr.bf16.mxu0 %v4268_v13  ;;  %2886 = vmatpush2.bf16.msra.mxu1 %v4311_v54  ;;  %v4326_v13 = vld [vmem:[#allocation12 + $0x60] sm:$0xff]  }
 0x23f   :  { %2887 = vmatprep.subr.bf16.mxu1 %v4316_v43  ;;  %v4331_v43 = vld [vmem:[#allocation12 + $0x10] sm:$0xff]  }
 0x241   :  { %2845 = vmatpush2.bf16.msra.mxu0 %v4266_v17  ;;  %v4329_v17 = vld [vmem:[#allocation12 + $0x18] sm:$0xff]  }
 0x242   :  { %2846 = vmatprep.subr.bf16.mxu0 %v4271_v18  ;;  %2888 = vmatpush2.bf16.msra.mxu1 %v4314_v62  ;;  %v4333_v62 = vld [vmem:[#allocation12 + $0x8] sm:$0xff]  }
 0x243   :  { %2889 = vmatprep.subr.bf16.mxu1 %v4319_v1  ;;  %v4337_v1 = vld [vmem:[%s4892_s9 + $0x30] sm:$0xff]  }
 0x245   :  { %2847 = vmatpush2.bf16.msra.mxu0 %v4269_v23  ;;  %v779_v23 = vrot.slane %v4797_v19, %v200_v42 }
 0x246   :  { %2890 = vmatpush2.bf16.msra.mxu1 %v4317_v10  ;;  %3743 = vmatprep.subr.bf16.mxu0 %v4320_v6  ;;  %v4339_v10 = vld [vmem:[%s4892_s9 + $0x20] sm:$0xff]  }
 0x248   :  { %v2184_v51 = vpop.f32.mrf.mxu0  ;;  %v2227_v33 = vpop.f32.mrf.mxu1 }
 0x249   :  { %v2185_v46 = vadd.f32 %v2184_v51, %v2142_v35 }
 0x24a   :  { %v2186_v36 = vpop.f32.mrf.mxu0  ;;  %v2229_v45 = vpop.f32.mrf.mxu1 }
 0x24b   :  { %v2187_v38 = vadd.f32 %v2186_v36, %v2144_v28  ;;  %v2228_v59 = vadd.f32 %v2227_v33, %v2185_v46 }
 0x24c   :  { %v2188_v47 = vpop.f32.mrf.mxu0  ;;  %v2231_v53 = vpop.f32.mrf.mxu1 }
 0x24d   :  { %v2189_v52 = vadd.f32 %v2188_v47, %v2146_v37  ;;  %v2230_v56 = vadd.f32 %v2229_v45, %v2187_v38  ;;  %v2408_v24 = vmax.f32 %v2228_v59, 0.0 }
 0x24e   :  { %v2190_v55 = vpop.f32.mrf.mxu0  ;;  %v2233_v60 = vpop.f32.mrf.mxu1 }
 0x24f   :  { %v2232_v57 = vadd.f32 %v2231_v53, %v2189_v52  ;;  %v2191_v58 = vadd.f32 %v2190_v55, %v2148_v50  ;;  %v2409_v5 = vmax.f32 %v2230_v56, 0.0 }
 0x251   :  { %v2234_v61 = vadd.f32 %v2233_v60, %v2191_v58  ;;  %v2412_v63 = vmax.f32 %v2232_v57, 0.0  ;;  %v4330_v60 = vld [vmem:[#allocation12 + $0x50] sm:$0xff]  }
 0x253   :  { %v2413_v0 = vmax.f32 %v2234_v61, 0.0  ;;  %v2416_v4 = vpack.c.bf16 %v2412_v63, %v2408_v24  ;;  %v4332_v61 = vld [vmem:[#allocation12 + $0x48] sm:$0xff]   ;;  %v4334_v63 = vld [vmem:[#allocation12 + $0x40] sm:$0xff]   ;;  %v4556_v24 = vmov 0.0  }
 0x254   :  { %3782 = vmatprep.subr.bf16.mxu1 %v4556_v24 }
 0x255   :  { %v2417_v2 = vpack.c.bf16 %v2413_v0, %v2409_v5  ;;  %v4335_v5 = vld [vmem:[#allocation12] sm:$0xff]  }
 0x256   :  { %v4336_v0 = vld [vmem:[%s4892_s9 + $0x38] sm:$0xff]  }
 0x257   :  { %2848 = vmatprep.mubr.bf16.mxu0 %v2417_v2  ;;  %v4338_v2 = vld [vmem:[%s4892_s9 + $0x28] sm:$0xff]  }
 0x258   :  { %2849 = vmatmul.mubr.bf16.vlgmr.msra.gmra.mxu0 %v2416_v4 }
 0x259   :  { %3744 = vmatpush3.bf16.msra.mxu0 %v4321_v7  ;;  %v2484_v7 = vld [vmem:[#allocation10] sm:$0x3] }
 0x25a   :  { %3745 = vmatprep.subr.bf16.mxu0 %v4322_v8 }
 0x25d   :  { %3746 = vmatpush3.bf16.msra.mxu0 %v4323_v9  ;;  %v2493_v9 = vrot.slane %v2484_v7, %v4726_v40 }
 0x25e   :  { %3747 = vmatprep.subr.bf16.mxu0 %v4324_v11  ;;  %v2489_v11 = vrot.slane %v2484_v7, %v4729_v41  ;;  %v4340_v41 = vld [vmem:[%s4892_s9 + $0x18] sm:$0xff]  }
 0x261   :  { %3748 = vmatpush3.bf16.msra.mxu0 %v4325_v12 }
 0x262   :  { %3749 = vmatprep.subr.bf16.mxu0 %v4326_v13 }
 0x265   :  { %3750 = vmatpush3.bf16.msra.mxu0 %v4327_v14 }
 0x266   :  { %3751 = vmatprep.subr.bf16.mxu0 %v4328_v15 }
 0x269   :  { %3752 = vmatpush3.bf16.msra.mxu0 %v4329_v17 }
 0x26a   :  { %3753 = vmatprep.subr.bf16.mxu0 %v4330_v60 }
 0x26d   :  { %3754 = vmatpush3.bf16.msra.mxu0 %v4331_v43 }
 0x26e   :  { %3755 = vmatprep.subr.bf16.mxu0 %v4332_v61  ;;  %v4348_v61 = vld [vmem:[#allocation15 + $0x8] sm:$0xff]  }
 0x271   :  { %3756 = vmatpush3.bf16.msra.mxu0 %v4333_v62  ;;  %v4349_v62 = vld [vmem:[#allocation15] sm:$0xff]  }
 0x272   :  { %3757 = vmatprep.subr.bf16.mxu0 %v4334_v63  ;;  %v3733_v63 = vld [vmem:[%s4895_s12] ss:$0 sm:$0xff] }
 0x275   :  { %3758 = vmatpush3.bf16.msra.mxu0 %v4335_v5 }
 0x276   :  { %3802 = vmatprep.subr.bf16.mxu0 %v4556_v24 }
 0x288   :  { %v2270_v16 = vpop.f32.mrf.mxu0 }
 0x289   :  { %v2313_v18 = vpop.f32.mrf.mxu1  ;;  %v2271_v29 = vadd.f32 %v2270_v16, %v775_v25 }
 0x28a   :  { %v2272_v21 = vpop.f32.mrf.mxu0 }
 0x28b   :  { %v2315_v22 = vpop.f32.mrf.mxu1  ;;  %v2273_v26 = vadd.f32 %v2272_v21, %v779_v23  ;;  %v2314_v33 = vadd.f32 %v2313_v18, %v2271_v29 }
 0x28c   :  { %v2274_v20 = vpop.f32.mrf.mxu0 }
 0x28d   :  { %v2317_v27 = vpop.f32.mrf.mxu1  ;;  %v2275_v30 = vadd.f32 %v2274_v20, %v775_v25  ;;  %v2316_v3 = vadd.f32 %v2315_v22, %v2273_v26 }
 0x28e   :  { %v2276_v48 = vpop.f32.mrf.mxu0 }
 0x28f   :  { %v2319_v31 = vpop.f32.mrf.mxu1  ;;  %v2277_v28 = vadd.f32 %v2276_v48, %v779_v23  ;;  %v2318_v35 = vadd.f32 %v2317_v27, %v2275_v30 }
 0x291   :  { %v2320_v38 = vadd.f32 %v2319_v31, %v2277_v28  ;;  %v4343_v28 = vld [vmem:[%s4892_s9] sm:$0xff]  }
 0x2c8   :  { %v2356_v51 = vpop.f32.mrf.mxu0 }
 0x2c9   :  { %v2399_v32 = vpop.f32.mrf.mxu1  ;;  %v2357_v37 = vadd.f32 %v2356_v51, %v2314_v33  ;;  %v4341_v51 = vld [vmem:[%s4892_s9 + $0x10] sm:$0xff]  }
 0x2ca   :  { %v2358_v34 = vpop.f32.mrf.mxu0 }
 0x2cb   :  { %v2359_v36 = vadd.f32 %v2358_v34, %v2316_v3  ;;  %v2401_v42 = vpop.f32.mrf.mxu1  ;;  %v2400_v50 = vadd.f32 %v2399_v32, %v2357_v37  ;;  %v4342_v3 = vld [vmem:[%s4892_s9 + $0x8] sm:$0xff]   ;;  %v4344_v32 = vld [vmem:[%s4894_s11 + $0x18] sm:$0xff]  }
 0x2cc   :  { %v2360_v39 = vpop.f32.mrf.mxu0 }
 0x2cd   :  { %v2361_v44 = vadd.f32 %v2360_v39, %v2318_v35  ;;  %v2403_v19 = vpop.f32.mrf.mxu1  ;;  %v2402_v46 = vadd.f32 %v2401_v42, %v2359_v36  ;;  %v2410_v57 = vmax.f32 %v2400_v50, 0.0  ;;  %v3707_v36 = vld [vmem:[#allocation13] ss:$0 sm:$0xff]  ;;  %v4347_v50 = vld [vmem:[%s4894_s11] sm:$0xff]  }
 0x2ce   :  { %v2362_v45 = vpop.f32.mrf.mxu0 }
 0x2cf   :  { %v2404_v47 = vadd.f32 %v2403_v19, %v2361_v44  ;;  %v2363_v49 = vadd.f32 %v2362_v45, %v2320_v38  ;;  %v2405_v52 = vpop.f32.mrf.mxu1  ;;  %v2411_v55 = vmax.f32 %v2402_v46, 0.0 }
 0x2d1   :  { %v2406_v53 = vadd.f32 %v2405_v52, %v2363_v49  ;;  %v2414_v54 = vmax.f32 %v2404_v47, 0.0  ;;  %v4345_v47 = vld [vmem:[%s4894_s11 + $0x10] sm:$0xff]   ;;  %v4346_v49 = vld [vmem:[%s4894_s11 + $0x8] sm:$0xff]   ;;  %v3724_v52 = vld [vmem:[%s4893_s10] ss:$0 sm:$0xff] }
 0x2d3   :  { %v2415_v56 = vmax.f32 %v2406_v53, 0.0  ;;  %v2418_v59 = vpack.c.bf16 %v2414_v54, %v2410_v57 }
 0x2d5   :  { %v2419_v58 = vpack.c.bf16 %v2415_v56, %v2411_v55 }
 0x2d7   :  { %2891 = vmatprep.mubr.bf16.mxu1 %v2419_v58 }
 0x2d8   :  { %2892 = vmatmul.mubr.bf16.vlgmr.msra.gmra.mxu1 %v2418_v59 }
 0x2d9   :  { %3783 = vmatpush3.bf16.msra.mxu1 %v4336_v0  ;;  %3798 = vmatprep.mubr.msk.bf16.mxu1 %vm4557_vm1, %v4556_v24 }
 0x2da   :  { %3784 = vmatprep.subr.bf16.mxu1 %v4556_v24 }
 0x2dd   :  { %3785 = vmatpush3.bf16.msra.mxu1 %v4337_v1 }
 0x2de   :  { %3786 = vmatprep.subr.bf16.mxu1 %v4556_v24 }
 0x2e1   :  { %3787 = vmatpush3.bf16.msra.mxu1 %v4338_v2 }
 0x2e2   :  { %3788 = vmatprep.subr.bf16.mxu1 %v4556_v24 }
 0x2e5   :  { %3789 = vmatpush3.bf16.msra.mxu1 %v4339_v10 }
 0x2e6   :  { %3790 = vmatprep.subr.bf16.mxu1 %v4556_v24 }
 0x2e9   :  { %3791 = vmatpush3.bf16.msra.mxu1 %v4340_v41 }
 0x2ea   :  { %3792 = vmatprep.subr.bf16.mxu1 %v4556_v24 }
 0x2ed   :  { %3793 = vmatpush3.bf16.msra.mxu1 %v4341_v51 }
 0x2ee   :  { %3794 = vmatprep.subr.bf16.mxu1 %v4556_v24 }
 0x2f1   :  { %3795 = vmatpush3.bf16.msra.mxu1 %v4342_v3 }
 0x2f2   :  { %3796 = vmatprep.subr.bf16.mxu1 %v4556_v24 }
 0x2f5   :  { %3797 = vmatpush3.bf16.msra.mxu1 %v4343_v28 }
 0x2f6   :  { %3814 = vmatprep.subr.bf16.mxu1 %v4556_v24 }
 0x318   :  { %v2850_v4 = vpop.f32.mrf.mxu0 }
 0x319   :  { %v2851_v16 = vadd.f32 %v2850_v4, %v2489_v11 }
 0x31a   :  { %v2852_v6 = vpop.f32.mrf.mxu0 }
 0x31b   :  { %v2853_v15 = vadd.f32 %v2852_v6, %v2493_v9 }
 0x31c   :  { %v2854_v8 = vpop.f32.mrf.mxu0 }
 0x31d   :  { %v2855_v17 = vadd.f32 %v2854_v8, %v2489_v11 }
 0x31e   :  { %v2856_v13 = vpop.f32.mrf.mxu0 }
 0x31f   :  { %v2857_v21 = vadd.f32 %v2856_v13, %v2493_v9 }
 0x398   :  { %v2893_v12 = vpop.f32.mrf.mxu1 }
 0x399   :  { %v2894_v25 = vadd.f32 %v2893_v12, %v2851_v16 }
 0x39a   :  { %v2895_v14 = vpop.f32.mrf.mxu1 }
 0x39b   :  { %v2896_v22 = vadd.f32 %v2895_v14, %v2853_v15  ;;  %v2902_v30 = vmax.f32 %v2894_v25, 0.0 }
 0x39c   :  { %v2897_v18 = vpop.f32.mrf.mxu1 }
 0x39d   :  { %v2898_v23 = vadd.f32 %v2897_v18, %v2855_v17  ;;  %v2903_v29 = vmax.f32 %v2896_v22, 0.0 }
 0x39e   :  { %v2899_v20 = vpop.f32.mrf.mxu1 }
 0x39f   :  { %v2900_v27 = vadd.f32 %v2899_v20, %v2857_v21  ;;  %v2904_v26 = vmax.f32 %v2898_v23, 0.0 }
 0x3a1   :  { %v2905_v48 = vmax.f32 %v2900_v27, 0.0  ;;  %v2906_v31 = vpack.c.bf16 %v2904_v26, %v2902_v30 }
 0x3a3   :  { %v2907_v40 = vpack.c.bf16 %v2905_v48, %v2903_v29 }
 0x3a5   :  { %3075 = vmatprep.mubr.bf16.mxu0 %v2907_v40 }
 0x3a6   :  { %3076 = vmatmul.mubr.bf16.vlgmr.msra.gmra.mxu0 %v2906_v31 }
 0x3a7   :  { %3810 = vmatprep.mubr.msk.bf16.mxu0 %vm4557_vm1, %v4556_v24  ;;  %3803 = vmatpush3.bf16.msra.mxu0 %v4344_v32 }
 0x3a8   :  { %3804 = vmatprep.subr.bf16.mxu0 %v4556_v24 }
 0x3ab   :  { %3805 = vmatpush3.bf16.msra.mxu0 %v4345_v47 }
 0x3ac   :  { %3806 = vmatprep.subr.bf16.mxu0 %v4556_v24 }
 0x3af   :  { %3807 = vmatpush3.bf16.msra.mxu0 %v4346_v49 }
 0x3b0   :  { %3808 = vmatprep.subr.bf16.mxu0 %v4556_v24 }
 0x3b3   :  { %3809 = vmatpush3.bf16.msra.mxu0 %v4347_v50 }
 0x466   :  { %v3759_v33 = vpop.f32.mrf.mxu0 }
 0x468   :  { %v3760_v34 = vpop.f32.mrf.mxu0 }
 0x469   :  { %v3761_v35 = vadd.f32 %v3760_v34, %v3759_v33 }
 0x46a   :  { %v3762_v42 = vpop.f32.mrf.mxu0 }
 0x46b   :  { %v3078_v39 = vadd.f32 %v3761_v35, %v3707_v36 }
 0x46c   :  { %v3763_v37 = vpop.f32.mrf.mxu0 }
 0x46d   :  { %v3764_v38 = vadd.f32 %v3763_v37, %v3762_v42  ;;  %v3084_v19 = vmax.f32 %v3078_v39, 0.0 }
 0x46f   :  { %v3081_v44 = vadd.f32 %v3764_v38, %v3707_v36 }
 0x471   :  { %v3085_v45 = vmax.f32 %v3081_v44, 0.0 }
 0x473   :  { %v3086_v46 = vpack.c.bf16 %v3085_v45, %v3084_v19 }
 0x475   :  { %3799 = vmatmul.mubr.bf16.vlgmr.msra.gmra.mxu1 %v3086_v46 }
 0x476   :  { %3818 = vmatprep.mubr.msk.bf16.mxu1 %vm4557_vm1, %v4556_v24  ;;  %3815 = vmatpush3.bf16.msra.mxu1 %v4348_v61 }
 0x477   :  { %3816 = vmatprep.subr.bf16.mxu1 %v4556_v24  ;;  %v3739_v24 = vld [vmem:[%s4897_s14] ss:$0 sm:$0xff] }
 0x47a   :  { %3817 = vmatpush3.bf16.msra.mxu1 %v4349_v62 }
 0x535   :  { %v3192_v53 = vpop.f32.mrf.mxu1 }
 0x536   :  { %v3193_v55 = vadd.f32 %v3724_v52, %v3192_v53 }
 0x537   :  { %v3800_v54 = vpop.f32.mrf.mxu1 }
 0x538   :  { %v3199_v59 = vmax.f32 %v3193_v55, 0.0 }
 0x539   :  { %v3195_v56 = vpop.f32.mrf.mxu1 }
 0x53a   :  { %v3196_v57 = vadd.f32 %v3724_v52, %v3195_v56 }
 0x53b   :  { %v3801_v58 = vpop.f32.mrf.mxu1 }
 0x53c   :  { %v3200_v60 = vmax.f32 %v3196_v57, 0.0 }
 0x53e   :  { %v3201_v43 = vpack.c.bf16 %v3200_v60, %v3199_v59 }
 0x540   :  { %3811 = vmatmul.mubr.msk.bf16.vlgmr.msra.gmra.mxu0 %vm3241_vm2, %v3201_v43 }
 0x600   :  { %v3279_v5 = vpop.f32.mrf.mxu0 }
 0x601   :  { %v3280_v1 = vadd.f32 %v3733_v63, %v3279_v5 }
 0x602   :  { %v3812_v0 = vpop.f32.mrf.mxu0 }
 0x603   :  { %v3286_v6 = vmax.f32 %v3280_v1, 0.0 }
 0x604   :  { %v3282_v2 = vpop.f32.mrf.mxu0 }
 0x605   :  { %v3283_v10 = vadd.f32 %v3733_v63, %v3282_v2 }
 0x606   :  { %v3813_v4 = vpop.f32.mrf.mxu0 }
 0x607   :  { %v3287_v7 = vmax.f32 %v3283_v10, 0.0 }
 0x609   :  { %v3288_v8 = vpack.c.bf16 %v3287_v7, %v3286_v6 }
 0x60b   :  { %3819 = vmatmul.mubr.msk.bf16.vlgmr.msra.gmra.mxu1 %vm306_vm0, %v3288_v8 }
 0x6cb   :  { %v3349_v9 = vpop.f32.mrf.mxu1 }
 0x6cc   :  { %v3350_v11 = vadd.f32 %v3739_v24, %v3349_v9 }
 0x6cd   :  { %v3820_v12 = vpop.f32.mrf.mxu1 }
 0x6ce   :  { %3356 = vst [vmem:[%s4898_s15] sm:$0xff] %v3350_v11 }
 0x6cf   :  { %v3352_v13 = vpop.f32.mrf.mxu1 }
 0x6d0   :  { %v3353_v14 = vadd.f32 %v3739_v24, %v3352_v13 }
 0x6d1   :  { %v3821_v15 = vpop.f32.mrf.mxu1 }
 0x6d2   :  { %3357 = vst [vmem:[%s4898_s15 + $0x8] sm:$0xff] %v3353_v14 }
 0x6d3   :  { %3362 = vsyncpa [#allocation3], 1 }
 0x6d4   :  { %3363 = vsyncpa [#allocation5], 1 }
 0x6d5   :  { %3364 = vsyncpa [#allocation8], 1 }
 0x6d6   :  { %3365 = vsyncpa [#allocation11], 1 }
 0x6d7   :  { %3366 = vsyncpa [#allocation14], 1 }

</bundles_post_ra>
